<compile_context>
chip_gen: v5e
topology: v5e:2x2
jax: 0.10.0
libtpu: 0.0.40
codegen_flags: <defaults>
</compile_context>

<pallas_src>
import functools

import jax
import jax.numpy as jnp
from jax.experimental import pallas as pl
from jax.experimental.pallas import tpu as pltpu


def _round_up(x, m):
    return ((x + m - 1) // m) * m


def _softplus(x):
    # matches F.softplus (beta=1): log(1 + exp(x)), numerically stable
    return jnp.logaddexp(0.0, x)


def mlp_encoder_kernel(
    x_ref,                 # [TB, Vp]       bf16
    w11_ref, b11_ref,      # [Vp, Hp] bf16, [1, Hp] f32
    w12_ref, b12_ref,      # [Hp, Hp] bf16, [1, Hp] f32
    w2_ref, b2_ref,        # [Hp, 2*Kp] bf16 (BN-folded fc21||fc22), [1, 2*Kp] f32
    out_ref,               # [TB, 3*Kp] f32  (theta || mu || logvar)
    *, kp, k,
):
    x = x_ref[...]

    # e1 = softplus(fc11(x))
    h = jnp.dot(x, w11_ref[...], preferred_element_type=jnp.float32) + b11_ref[...]
    e1 = _softplus(h)

    # e1 = softplus(fc12(e1)); fc1_drop is identity in eval mode
    h = jnp.dot(e1.astype(jnp.bfloat16), w12_ref[...],
                preferred_element_type=jnp.float32) + b12_ref[...]
    e1 = _softplus(h)

    # fused head: [mean_bn(fc21(e1)) || logvar_bn(fc22(e1))], BN pre-folded
    head = jnp.dot(e1.astype(jnp.bfloat16), w2_ref[...],
                   preferred_element_type=jnp.float32) + b2_ref[...]
    mu = head[:, :kp]
    lv = head[:, kp:]

    # reparameterize (eval): theta = softmax(mu, dim=1), masking padded cols
    col = jax.lax.broadcasted_iota(jnp.int32, mu.shape, 1)
    logits = jnp.where(col < k, mu, -1e30)
    m = jnp.max(logits, axis=-1, keepdims=True)
    p = jnp.exp(logits - m)
    theta = p / jnp.sum(p, axis=-1, keepdims=True)   # exact normalization
    # z_drop is identity in eval mode

    # single wide lane-dense store: theta || mu || logvar
    out_ref[...] = jnp.concatenate([theta, mu, lv], axis=-1)


def _select_tiling(B, Vp, Hp, Kp, block_b, weight_buffers):
    """Pick the batch tile TB and a matching vmem_limit for this generation."""
    weight_bytes = weight_buffers * (Vp * Hp + Hp * Hp + Hp * 2 * Kp) * 2   # bf16
    bias_bytes = weight_buffers * (2 * Hp + 2 * Kp) * 4                      # f32
    resident = weight_bytes + bias_bytes

    def stream_bytes(tb):
        # double-buffered streamed x tile (bf16) + fused output tile (f32)
        return 2 * tb * Vp * 2 + 2 * tb * 3 * Kp * 4

    try:
        vmem_cap = int(pltpu.get_tpu_info().vmem_capacity_bytes)
    except Exception:
        vmem_cap = 64 << 20   # conservative (v7x per-TC) if the query fails
    budget = vmem_cap * 85 // 100   # headroom for compiler scratch

    # balanced batch tiles; at least two when B allows (v7x has 2 TCs/chip)
    n_tiles = pl.cdiv(B, block_b)
    if B > 8:
        n_tiles = max(n_tiles, 2)
    tb = _round_up(pl.cdiv(B, n_tiles), 8)
    # auto-shrink TB until streamed buffers fit alongside resident weights
    while tb > 8 and resident + stream_bytes(tb) > budget:
        tb = _round_up(pl.cdiv(tb, 2), 8)
    # TODO(synk): if `resident` alone exceeds the budget (very large vocab),
    # switch to the vocab/contraction grid axis instead of shrinking TB.

    need = resident + stream_bytes(tb)
    vmem_limit = int(min(max(need + (4 << 20), 16 << 20), vmem_cap))
    return tb, vmem_limit, resident


def mlp_encoder_forward(x, params, *, block_b=512):
    B, V = x.shape
    assert V == params["vocab_size"]
    Vp, Hp, Kp, K = params["vp"], params["hp"], params["kp"], params["num_topic"]

    weight_args = (params["w11"], params["b11"], params["w12"], params["b12"],
                   params["w_head"], params["b_head"])
    const = lambda i: (0, 0)

    out = None
    # Prefer single-buffered resident weights (pl.Buffered(1)); fall back to
    # the default 2-deep buffering (with a matching 2x budget) if rejected.
    for weight_buffers in (1, 2):
        tb, vmem_limit, resident = _select_tiling(B, Vp, Hp, Kp, block_b,
                                                  weight_buffers)
        b_pad = _round_up(B, tb)
        n_tiles = b_pad // tb

        xk = x.astype(jnp.bfloat16)
        if b_pad != B or Vp != V:
            xk = jnp.pad(xk, ((0, b_pad - B), (0, Vp - V)))

        cost = pl.CostEstimate(
            flops=2 * b_pad * (Vp * Hp + Hp * Hp + Hp * 2 * Kp),
            transcendentals=b_pad * (2 * Hp + Kp),
            bytes_accessed=b_pad * Vp * 2 + resident + b_pad * 3 * Kp * 4,
        )

        if weight_buffers == 1:
            def wspec(shape):
                return pl.BlockSpec(shape, const, pipeline_mode=pl.Buffered(1))
        else:
            def wspec(shape):
                return pl.BlockSpec(shape, const)

        call = pl.pallas_call(
            functools.partial(mlp_encoder_kernel, kp=Kp, k=K),
            out_shape=jax.ShapeDtypeStruct((b_pad, 3 * Kp), jnp.float32),
            grid_spec=pltpu.PrefetchScalarGridSpec(
                num_scalar_prefetch=0,
                grid=(n_tiles,),
                in_specs=[
                    pl.BlockSpec((tb, Vp), lambda i: (i, 0)),  # x: streamed/tile
                    wspec((Vp, Hp)), wspec((1, Hp)),           # weights/biases:
                    wspec((Hp, Hp)), wspec((1, Hp)),           # fetched once,
                    wspec((Hp, 2 * Kp)), wspec((1, 2 * Kp)),   # VMEM-resident
                ],
                out_specs=pl.BlockSpec((tb, 3 * Kp), lambda i: (i, 0)),
            ),
            compiler_params=pltpu.CompilerParams(
                dimension_semantics=("parallel",),
                vmem_limit_bytes=vmem_limit,
            ),
            cost_estimate=cost,
        )
        try:
            out = call(xk, *weight_args)
            break
        except Exception:
            if weight_buffers == 2:
                raise

    theta = out[:B, :K]
    mu = out[:B, Kp:Kp + K]
    logvar = out[:B, 2 * Kp:2 * Kp + K]
    return theta, mu, logvar


def init_params(key, vocab_size, num_topic, hidden_dim):
    ks = jax.random.split(key, 8)

    def linear(kw, kb, fan_in, fan_out):
        # PyTorch nn.Linear default init: U(-1/sqrt(fan_in), 1/sqrt(fan_in)),
        # weight stored pre-transposed as [in, out].
        bound = 1.0 / float(fan_in) ** 0.5
        w = jax.random.uniform(kw, (fan_in, fan_out), jnp.float32, -bound, bound)
        b = jax.random.uniform(kb, (fan_out,), jnp.float32, -bound, bound)
        return w, b

    w11, b11 = linear(ks[0], ks[1], vocab_size, hidden_dim)
    w12, b12 = linear(ks[2], ks[3], hidden_dim, hidden_dim)
    w21, b21 = linear(ks[4], ks[5], hidden_dim, num_topic)
    w22, b22 = linear(ks[6], ks[7], hidden_dim, num_topic)

    # BatchNorm1d eval-mode fold (defaults: weight=1, bias=0, running_mean=0,
    # running_var=1, eps=1e-5): scale = w/sqrt(var+eps), shift = b - mean*scale
    eps = 1e-5
    bn_scale = (1.0 / jnp.sqrt(1.0 + eps)) * jnp.ones((num_topic,), jnp.float32)
    bn_shift = jnp.zeros((num_topic,), jnp.float32)
    # TODO(synk): for trained checkpoints, feed real running_mean/var and BN
    #             affine params into this fold instead of the defaults.

    w21f = w21 * bn_scale[None, :]
    b21f = b21 * bn_scale + bn_shift
    w22f = w22 * bn_scale[None, :]
    b22f = b22 * bn_scale + bn_shift

    # pad V, H, K up to lane multiples; zero padding keeps numerics exact
    Vp = _round_up(vocab_size, 128)
    Hp = _round_up(hidden_dim, 128)
    Kp = _round_up(num_topic, 128)

    def pad2(w, rows, cols):
        return jnp.pad(w, ((0, rows - w.shape[0]), (0, cols - w.shape[1])))

    def pad1(b, n):
        return jnp.pad(b, ((0, n - b.shape[0]),))

    w_head = jnp.concatenate([pad2(w21f, hidden_dim, Kp),
                              pad2(w22f, hidden_dim, Kp)], axis=1)   # [H, 2*Kp]
    b_head = jnp.concatenate([pad1(b21f, Kp), pad1(b22f, Kp)])       # [2*Kp]

    kernel_params = dict(
        vocab_size=vocab_size, num_topic=num_topic, vp=Vp, hp=Hp, kp=Kp,
        w11=pad2(w11, Vp, Hp).astype(jnp.bfloat16), b11=pad1(b11, Hp)[None, :],
        w12=pad2(w12, Hp, Hp).astype(jnp.bfloat16), b12=pad1(b12, Hp)[None, :],
        w_head=pad2(w_head, Hp, 2 * Kp).astype(jnp.bfloat16),
        b_head=b_head[None, :],
    )
    # unpadded folded weights for the pure-JAX reference (same bf16-operand /
    # f32-accumulate numerics, no padding -> also validates padding exactness)
    ref_params = dict(
        w11=w11.astype(jnp.bfloat16), b11=b11[None, :],
        w12=w12.astype(jnp.bfloat16), b12=b12[None, :],
        w21=w21f.astype(jnp.bfloat16), b21=b21f[None, :],
        w22=w22f.astype(jnp.bfloat16), b22=b22f[None, :],
    )
    return kernel_params, ref_params


def reference_forward(x, rp):
    xb = x.astype(jnp.bfloat16)
    e1 = jax.nn.softplus(
        jnp.dot(xb, rp["w11"], preferred_element_type=jnp.float32) + rp["b11"])
    e1 = jax.nn.softplus(
        jnp.dot(e1.astype(jnp.bfloat16), rp["w12"],
                preferred_element_type=jnp.float32) + rp["b12"])
    e1b = e1.astype(jnp.bfloat16)
    mu = jnp.dot(e1b, rp["w21"], preferred_element_type=jnp.float32) + rp["b21"]
    lv = jnp.dot(e1b, rp["w22"], preferred_element_type=jnp.float32) + rp["b22"]
    theta = jax.nn.softmax(mu, axis=1)
    return theta, mu, lv


if __name__ == "__main__":
    # small harness shapes chosen to exercise V/H/K lane padding and batch
    # padding with balanced tiles
    vocab_size, num_topic, hidden_dim = 250, 32, 100
    batch = 70

    key = jax.random.PRNGKey(0)
    k_x, k_p = jax.random.split(key)

    # bag-of-words-like nonnegative input
    x = jax.nn.relu(jax.random.normal(k_x, (batch, vocab_size), jnp.float32))
    kernel_params, ref_params = init_params(k_p, vocab_size, num_topic, hidden_dim)

    # block_b=32 -> a multi-step batch grid even at this small harness size
    theta, mu, logvar = mlp_encoder_forward(x, kernel_params, block_b=32)
    jax.block_until_ready((theta, mu, logvar))

    theta_r, mu_r, logvar_r = reference_forward(x, ref_params)
    assert theta.shape == (batch, num_topic)
    assert mu.shape == (batch, num_topic)
    assert logvar.shape == (batch, num_topic)
    assert jnp.allclose(theta, theta_r, atol=2e-3, rtol=2e-3)
    assert jnp.allclose(mu, mu_r, atol=2e-3, rtol=2e-3)
    assert jnp.allclose(logvar, logvar_r, atol=2e-3, rtol=2e-3)
    # exact normalization (exact divide in the softmax epilogue)
    assert jnp.allclose(jnp.sum(theta, axis=1), 1.0, atol=1e-5)

    print("KERNEL_OK")
</pallas_src>

<mosaic_0001>
module attributes {stable_mosaic.version = 11 : i64} {
  func.func @mlp_encoder_kernel(%arg0: i32, %arg1: memref<24x256xbf16, #tpu.memory_space<vmem>>, %arg2: memref<256x128xbf16, #tpu.memory_space<vmem>>, %arg3: memref<1x128xf32, #tpu.memory_space<vmem>>, %arg4: memref<128x128xbf16, #tpu.memory_space<vmem>>, %arg5: memref<1x128xf32, #tpu.memory_space<vmem>>, %arg6: memref<128x256xbf16, #tpu.memory_space<vmem>>, %arg7: memref<1x256xf32, #tpu.memory_space<vmem>>, %arg8: memref<24x384xf32, #tpu.memory_space<vmem>>) attributes {dimension_semantics = [#tpu.dimension_semantics<parallel>], iteration_bounds = array<i64: 3>, scalar_prefetch = 0 : i64, scratch_operands = 0 : i64, tpu.core_type = #tpu.core_type<tc>, window_params = [{transform_indices = @transform_0, window_bounds = array<i64: 24, 256>}, {pipeline_mode = #tpu.pipeline_mode<synchronous>, transform_indices = @transform_1, window_bounds = array<i64: 256, 128>}, {pipeline_mode = #tpu.pipeline_mode<synchronous>, transform_indices = @transform_2, window_bounds = array<i64: 1, 128>}, {pipeline_mode = #tpu.pipeline_mode<synchronous>, transform_indices = @transform_3, window_bounds = array<i64: 128, 128>}, {pipeline_mode = #tpu.pipeline_mode<synchronous>, transform_indices = @transform_4, window_bounds = array<i64: 1, 128>}, {pipeline_mode = #tpu.pipeline_mode<synchronous>, transform_indices = @transform_5, window_bounds = array<i64: 128, 256>}, {pipeline_mode = #tpu.pipeline_mode<synchronous>, transform_indices = @transform_6, window_bounds = array<i64: 1, 256>}, {transform_indices = @transform_7, window_bounds = array<i64: 24, 384>}]} {
    %c0 = arith.constant 0 : index
    %c0_0 = arith.constant 0 : index
    %0 = vector.load %arg1[%c0, %c0_0] : memref<24x256xbf16, #tpu.memory_space<vmem>>, vector<24x256xbf16>
    %c0_1 = arith.constant 0 : index
    %c0_2 = arith.constant 0 : index
    %1 = vector.load %arg2[%c0_1, %c0_2] : memref<256x128xbf16, #tpu.memory_space<vmem>>, vector<256x128xbf16>
    %cst = arith.constant dense<0.000000e+00> : vector<24x128xf32>
    %2 = tpu.matmul %0, %1, %cst {dimension_numbers = #tpu.dot_dimension_numbers<[1], [0], [0], [1], [0, 0, 1, 1], [], []>} : vector<24x256xbf16>, vector<256x128xbf16>, vector<24x128xf32> -> vector<24x128xf32>
    %c0_3 = arith.constant 0 : index
    %c0_4 = arith.constant 0 : index
    %3 = vector.load %arg3[%c0_3, %c0_4] : memref<1x128xf32, #tpu.memory_space<vmem>>, vector<1x128xf32>
    %4 = vector.broadcast %3 : vector<1x128xf32> to vector<24x128xf32>
    %5 = arith.addf %2, %4 : vector<24x128xf32>
    %cst_5 = arith.constant 0.000000e+00 : f32
    %6 = vector.broadcast %cst_5 : f32 to vector<24x128xf32>
    %7 = arith.maximumf %6, %5 : vector<24x128xf32>
    %8 = vector.broadcast %cst_5 : f32 to vector<24x128xf32>
    %9 = arith.subf %8, %5 : vector<24x128xf32>
    %10 = arith.cmpf one, %9, %9 : vector<24x128xf32>
    %11 = vector.broadcast %cst_5 : f32 to vector<24x128xf32>
    %12 = arith.addf %11, %5 : vector<24x128xf32>
    %13 = math.absf %9 : vector<24x128xf32>
    %cst_6 = arith.constant 0.000000e+00 : f32
    %14 = vector.broadcast %cst_6 : f32 to vector<24x128xf32>
    %15 = arith.subf %14, %13 : vector<24x128xf32>
    %16 = math.exp %15 : vector<24x128xf32>
    %17 = math.log1p %16 : vector<24x128xf32>
    %18 = arith.addf %7, %17 : vector<24x128xf32>
    %19 = arith.select %10, %12, %18 : vector<24x128xi1>, vector<24x128xf32>
    %20 = arith.truncf %19 : vector<24x128xf32> to vector<24x128xbf16>
    %c0_7 = arith.constant 0 : index
    %c0_8 = arith.constant 0 : index
    %21 = vector.load %arg4[%c0_7, %c0_8] : memref<128x128xbf16, #tpu.memory_space<vmem>>, vector<128x128xbf16>
    %cst_9 = arith.constant dense<0.000000e+00> : vector<24x128xf32>
    %22 = tpu.matmul %20, %21, %cst_9 {dimension_numbers = #tpu.dot_dimension_numbers<[1], [0], [0], [1], [0, 0, 1, 1], [], []>} : vector<24x128xbf16>, vector<128x128xbf16>, vector<24x128xf32> -> vector<24x128xf32>
    %c0_10 = arith.constant 0 : index
    %c0_11 = arith.constant 0 : index
    %23 = vector.load %arg5[%c0_10, %c0_11] : memref<1x128xf32, #tpu.memory_space<vmem>>, vector<1x128xf32>
    %24 = vector.broadcast %23 : vector<1x128xf32> to vector<24x128xf32>
    %25 = arith.addf %22, %24 : vector<24x128xf32>
    %cst_12 = arith.constant 0.000000e+00 : f32
    %26 = vector.broadcast %cst_12 : f32 to vector<24x128xf32>
    %27 = arith.maximumf %26, %25 : vector<24x128xf32>
    %28 = vector.broadcast %cst_12 : f32 to vector<24x128xf32>
    %29 = arith.subf %28, %25 : vector<24x128xf32>
    %30 = arith.cmpf one, %29, %29 : vector<24x128xf32>
    %31 = vector.broadcast %cst_12 : f32 to vector<24x128xf32>
    %32 = arith.addf %31, %25 : vector<24x128xf32>
    %33 = math.absf %29 : vector<24x128xf32>
    %cst_13 = arith.constant 0.000000e+00 : f32
    %34 = vector.broadcast %cst_13 : f32 to vector<24x128xf32>
    %35 = arith.subf %34, %33 : vector<24x128xf32>
    %36 = math.exp %35 : vector<24x128xf32>
    %37 = math.log1p %36 : vector<24x128xf32>
    %38 = arith.addf %27, %37 : vector<24x128xf32>
    %39 = arith.select %30, %32, %38 : vector<24x128xi1>, vector<24x128xf32>
    %40 = arith.truncf %39 : vector<24x128xf32> to vector<24x128xbf16>
    %c0_14 = arith.constant 0 : index
    %c0_15 = arith.constant 0 : index
    %41 = vector.load %arg6[%c0_14, %c0_15] : memref<128x256xbf16, #tpu.memory_space<vmem>>, vector<128x256xbf16>
    %cst_16 = arith.constant dense<0.000000e+00> : vector<24x256xf32>
    %42 = tpu.matmul %40, %41, %cst_16 {dimension_numbers = #tpu.dot_dimension_numbers<[1], [0], [0], [1], [0, 0, 1, 1], [], []>} : vector<24x128xbf16>, vector<128x256xbf16>, vector<24x256xf32> -> vector<24x256xf32>
    %c0_17 = arith.constant 0 : index
    %c0_18 = arith.constant 0 : index
    %43 = vector.load %arg7[%c0_17, %c0_18] : memref<1x256xf32, #tpu.memory_space<vmem>>, vector<1x256xf32>
    %44 = vector.broadcast %43 : vector<1x256xf32> to vector<24x256xf32>
    %45 = arith.addf %42, %44 : vector<24x256xf32>
    %46 = vector.extract_strided_slice %45 {offsets = [0, 0], sizes = [24, 128], strides = [1, 1]} : vector<24x256xf32> to vector<24x128xf32>
    %47 = vector.extract_strided_slice %45 {offsets = [0, 128], sizes = [24, 128], strides = [1, 1]} : vector<24x256xf32> to vector<24x128xf32>
    %48 = tpu.iota {dimensions = array<i32: 1>} : vector<24x128xi32>
    %c32_i32 = arith.constant 32 : i32
    %49 = vector.broadcast %c32_i32 : i32 to vector<24x128xi32>
    %50 = arith.cmpi slt, %48, %49 : vector<24x128xi32>
    %cst_19 = arith.constant -1.000000e+30 : f32
    %51 = vector.broadcast %cst_19 : f32 to vector<24x128xf32>
    %52 = arith.select %50, %46, %51 : vector<24x128xi1>, vector<24x128xf32>
    %cst_20 = arith.constant dense<0xFF800000> : vector<24xf32>
    %53 = vector.multi_reduction <maximumf>, %52, %cst_20 [1] : vector<24x128xf32> to vector<24xf32>
    %54 = vector.shape_cast %53 : vector<24xf32> to vector<24x1xf32>
    %55 = vector.broadcast %54 : vector<24x1xf32> to vector<24x128xf32>
    %56 = arith.subf %52, %55 : vector<24x128xf32>
    %57 = math.exp %56 : vector<24x128xf32>
    %cst_21 = arith.constant dense<0.000000e+00> : vector<24xf32>
    %58 = vector.multi_reduction <add>, %57, %cst_21 [1] : vector<24x128xf32> to vector<24xf32>
    %59 = vector.shape_cast %58 : vector<24xf32> to vector<24x1xf32>
    %60 = vector.broadcast %59 : vector<24x1xf32> to vector<24x128xf32>
    %61 = arith.divf %57, %60 : vector<24x128xf32>
    %62 = tpu.concatenate %61, %46, %47 in 1 : vector<24x128xf32>, vector<24x128xf32>, vector<24x128xf32> -> vector<24x384xf32>
    %c0_22 = arith.constant 0 : index
    %c0_23 = arith.constant 0 : index
    %63 = vector.load %arg8[%c0_22, %c0_23] : memref<24x384xf32, #tpu.memory_space<vmem>>, vector<24x384xf32>
    tpu.vector_store %arg8[%c0_22, %c0_23], %62 {strides = array<i32>} : memref<24x384xf32, #tpu.memory_space<vmem>>, vector<24x384xf32>,
    return
  }
  func.func @transform_0(%arg0: i32) -> (i32, i32) {
    %c0_i32 = arith.constant 0 : i32
    %c0_i32_0 = arith.constant 0 : i32
    return %arg0, %c0_i32 : i32, i32
  }
  func.func @transform_1(%arg0: i32) -> (i32, i32) {
    %c0_i32 = arith.constant 0 : i32
    %c0_i32_0 = arith.constant 0 : i32
    %c0_i32_1 = arith.constant 0 : i32
    return %c0_i32, %c0_i32_0 : i32, i32
  }
  func.func @transform_2(%arg0: i32) -> (i32, i32) {
    %c0_i32 = arith.constant 0 : i32
    %c0_i32_0 = arith.constant 0 : i32
    %c0_i32_1 = arith.constant 0 : i32
    return %c0_i32, %c0_i32_0 : i32, i32
  }
  func.func @transform_3(%arg0: i32) -> (i32, i32) {
    %c0_i32 = arith.constant 0 : i32
    %c0_i32_0 = arith.constant 0 : i32
    %c0_i32_1 = arith.constant 0 : i32
    return %c0_i32, %c0_i32_0 : i32, i32
  }
  func.func @transform_4(%arg0: i32) -> (i32, i32) {
    %c0_i32 = arith.constant 0 : i32
    %c0_i32_0 = arith.constant 0 : i32
    %c0_i32_1 = arith.constant 0 : i32
    return %c0_i32, %c0_i32_0 : i32, i32
  }
  func.func @transform_5(%arg0: i32) -> (i32, i32) {
    %c0_i32 = arith.constant 0 : i32
    %c0_i32_0 = arith.constant 0 : i32
    %c0_i32_1 = arith.constant 0 : i32
    return %c0_i32, %c0_i32_0 : i32, i32
  }
  func.func @transform_6(%arg0: i32) -> (i32, i32) {
    %c0_i32 = arith.constant 0 : i32
    %c0_i32_0 = arith.constant 0 : i32
    %c0_i32_1 = arith.constant 0 : i32
    return %c0_i32, %c0_i32_0 : i32, i32
  }
  func.func @transform_7(%arg0: i32) -> (i32, i32) {
    %c0_i32 = arith.constant 0 : i32
    %c0_i32_0 = arith.constant 0 : i32
    return %arg0, %c0_i32 : i32, i32
  }
}

module attributes {stable_mosaic.version = 11 : i64} {
  func.func @mlp_encoder_kernel(%arg0: i32, %arg1: memref<24x256xbf16, #tpu.memory_space<vmem>>, %arg2: memref<256x128xbf16, #tpu.memory_space<vmem>>, %arg3: memref<1x128xf32, #tpu.memory_space<vmem>>, %arg4: memref<128x128xbf16, #tpu.memory_space<vmem>>, %arg5: memref<1x128xf32, #tpu.memory_space<vmem>>, %arg6: memref<128x256xbf16, #tpu.memory_space<vmem>>, %arg7: memref<1x256xf32, #tpu.memory_space<vmem>>, %arg8: memref<24x384xf32, #tpu.memory_space<vmem>>) attributes {dimension_semantics = [#tpu.dimension_semantics<parallel>], iteration_bounds = array<i64: 3>, scalar_prefetch = 0 : i64, scratch_operands = 0 : i64, tpu.core_type = #tpu.core_type<tc>, window_params = [{transform_indices = @transform_0, window_bounds = array<i64: 24, 256>}, {pipeline_mode = #tpu.pipeline_mode<synchronous>, transform_indices = @transform_1, window_bounds = array<i64: 256, 128>}, {pipeline_mode = #tpu.pipeline_mode<synchronous>, transform_indices = @transform_2, window_bounds = array<i64: 1, 128>}, {pipeline_mode = #tpu.pipeline_mode<synchronous>, transform_indices = @transform_3, window_bounds = array<i64: 128, 128>}, {pipeline_mode = #tpu.pipeline_mode<synchronous>, transform_indices = @transform_4, window_bounds = array<i64: 1, 128>}, {pipeline_mode = #tpu.pipeline_mode<synchronous>, transform_indices = @transform_5, window_bounds = array<i64: 128, 256>}, {pipeline_mode = #tpu.pipeline_mode<synchronous>, transform_indices = @transform_6, window_bounds = array<i64: 1, 256>}, {transform_indices = @transform_7, window_bounds = array<i64: 24, 384>}]} {
    %c0 = arith.constant 0 : index
    %c0_0 = arith.constant 0 : index
    %0 = vector.load %arg1[%c0, %c0_0] : memref<24x256xbf16, #tpu.memory_space<vmem>>, vector<24x256xbf16>
    %c0_1 = arith.constant 0 : index
    %c0_2 = arith.constant 0 : index
    %1 = vector.load %arg2[%c0_1, %c0_2] : memref<256x128xbf16, #tpu.memory_space<vmem>>, vector<256x128xbf16>
    %cst = arith.constant dense<0.000000e+00> : vector<24x128xf32>
    %2 = tpu.matmul %0, %1, %cst {dimension_numbers = #tpu.dot_dimension_numbers<[1], [0], [0], [1], [0, 0, 1, 1], [], []>} : vector<24x256xbf16>, vector<256x128xbf16>, vector<24x128xf32> -> vector<24x128xf32>
    %c0_3 = arith.constant 0 : index
    %c0_4 = arith.constant 0 : index
    %3 = vector.load %arg3[%c0_3, %c0_4] : memref<1x128xf32, #tpu.memory_space<vmem>>, vector<1x128xf32>
    %4 = vector.broadcast %3 : vector<1x128xf32> to vector<24x128xf32>
    %5 = arith.addf %2, %4 : vector<24x128xf32>
    %cst_5 = arith.constant 0.000000e+00 : f32
    %6 = vector.broadcast %cst_5 : f32 to vector<24x128xf32>
    %7 = arith.maximumf %6, %5 : vector<24x128xf32>
    %8 = vector.broadcast %cst_5 : f32 to vector<24x128xf32>
    %9 = arith.subf %8, %5 : vector<24x128xf32>
    %10 = arith.cmpf one, %9, %9 : vector<24x128xf32>
    %11 = vector.broadcast %cst_5 : f32 to vector<24x128xf32>
    %12 = arith.addf %11, %5 : vector<24x128xf32>
    %13 = math.absf %9 : vector<24x128xf32>
    %cst_6 = arith.constant 0.000000e+00 : f32
    %14 = vector.broadcast %cst_6 : f32 to vector<24x128xf32>
    %15 = arith.subf %14, %13 : vector<24x128xf32>
    %16 = math.exp %15 : vector<24x128xf32>
    %17 = math.log1p %16 : vector<24x128xf32>
    %18 = arith.addf %7, %17 : vector<24x128xf32>
    %19 = arith.select %10, %12, %18 : vector<24x128xi1>, vector<24x128xf32>
    %20 = arith.truncf %19 : vector<24x128xf32> to vector<24x128xbf16>
    %c0_7 = arith.constant 0 : index
    %c0_8 = arith.constant 0 : index
    %21 = vector.load %arg4[%c0_7, %c0_8] : memref<128x128xbf16, #tpu.memory_space<vmem>>, vector<128x128xbf16>
    %cst_9 = arith.constant dense<0.000000e+00> : vector<24x128xf32>
    %22 = tpu.matmul %20, %21, %cst_9 {dimension_numbers = #tpu.dot_dimension_numbers<[1], [0], [0], [1], [0, 0, 1, 1], [], []>} : vector<24x128xbf16>, vector<128x128xbf16>, vector<24x128xf32> -> vector<24x128xf32>
    %c0_10 = arith.constant 0 : index
    %c0_11 = arith.constant 0 : index
    %23 = vector.load %arg5[%c0_10, %c0_11] : memref<1x128xf32, #tpu.memory_space<vmem>>, vector<1x128xf32>
    %24 = vector.broadcast %23 : vector<1x128xf32> to vector<24x128xf32>
    %25 = arith.addf %22, %24 : vector<24x128xf32>
    %cst_12 = arith.constant 0.000000e+00 : f32
    %26 = vector.broadcast %cst_12 : f32 to vector<24x128xf32>
    %27 = arith.maximumf %26, %25 : vector<24x128xf32>
    %28 = vector.broadcast %cst_12 : f32 to vector<24x128xf32>
    %29 = arith.subf %28, %25 : vector<24x128xf32>
    %30 = arith.cmpf one, %29, %29 : vector<24x128xf32>
    %31 = vector.broadcast %cst_12 : f32 to vector<24x128xf32>
    %32 = arith.addf %31, %25 : vector<24x128xf32>
    %33 = math.absf %29 : vector<24x128xf32>
    %cst_13 = arith.constant 0.000000e+00 : f32
    %34 = vector.broadcast %cst_13 : f32 to vector<24x128xf32>
    %35 = arith.subf %34, %33 : vector<24x128xf32>
    %36 = math.exp %35 : vector<24x128xf32>
    %37 = math.log1p %36 : vector<24x128xf32>
    %38 = arith.addf %27, %37 : vector<24x128xf32>
    %39 = arith.select %30, %32, %38 : vector<24x128xi1>, vector<24x128xf32>
    %40 = arith.truncf %39 : vector<24x128xf32> to vector<24x128xbf16>
    %c0_14 = arith.constant 0 : index
    %c0_15 = arith.constant 0 : index
    %41 = vector.load %arg6[%c0_14, %c0_15] : memref<128x256xbf16, #tpu.memory_space<vmem>>, vector<128x256xbf16>
    %cst_16 = arith.constant dense<0.000000e+00> : vector<24x256xf32>
    %42 = tpu.matmul %40, %41, %cst_16 {dimension_numbers = #tpu.dot_dimension_numbers<[1], [0], [0], [1], [0, 0, 1, 1], [], []>} : vector<24x128xbf16>, vector<128x256xbf16>, vector<24x256xf32> -> vector<24x256xf32>
    %c0_17 = arith.constant 0 : index
    %c0_18 = arith.constant 0 : index
    %43 = vector.load %arg7[%c0_17, %c0_18] : memref<1x256xf32, #tpu.memory_space<vmem>>, vector<1x256xf32>
    %44 = vector.broadcast %43 : vector<1x256xf32> to vector<24x256xf32>
    %45 = arith.addf %42, %44 : vector<24x256xf32>
    %46 = vector.extract_strided_slice %45 {offsets = [0, 0], sizes = [24, 128], strides = [1, 1]} : vector<24x256xf32> to vector<24x128xf32>
    %47 = vector.extract_strided_slice %45 {offsets = [0, 128], sizes = [24, 128], strides = [1, 1]} : vector<24x256xf32> to vector<24x128xf32>
    %48 = tpu.iota {dimensions = array<i32: 1>} : vector<24x128xi32>
    %c32_i32 = arith.constant 32 : i32
    %49 = vector.broadcast %c32_i32 : i32 to vector<24x128xi32>
    %50 = arith.cmpi slt, %48, %49 : vector<24x128xi32>
    %cst_19 = arith.constant -1.000000e+30 : f32
    %51 = vector.broadcast %cst_19 : f32 to vector<24x128xf32>
    %52 = arith.select %50, %46, %51 : vector<24x128xi1>, vector<24x128xf32>
    %cst_20 = arith.constant dense<0xFF800000> : vector<24xf32>
    %53 = vector.multi_reduction <maximumf>, %52, %cst_20 [1] : vector<24x128xf32> to vector<24xf32>
    %54 = vector.shape_cast %53 : vector<24xf32> to vector<24x1xf32>
    %55 = vector.broadcast %54 : vector<24x1xf32> to vector<24x128xf32>
    %56 = arith.subf %52, %55 : vector<24x128xf32>
    %57 = math.exp %56 : vector<24x128xf32>
    %cst_21 = arith.constant dense<0.000000e+00> : vector<24xf32>
    %58 = vector.multi_reduction <add>, %57, %cst_21 [1] : vector<24x128xf32> to vector<24xf32>
    %59 = vector.shape_cast %58 : vector<24xf32> to vector<24x1xf32>
    %60 = vector.broadcast %59 : vector<24x1xf32> to vector<24x128xf32>
    %61 = arith.divf %57, %60 : vector<24x128xf32>
    %62 = tpu.concatenate %61, %46, %47 in 1 : vector<24x128xf32>, vector<24x128xf32>, vector<24x128xf32> -> vector<24x384xf32>
    %c0_22 = arith.constant 0 : index
    %c0_23 = arith.constant 0 : index
    %63 = vector.load %arg8[%c0_22, %c0_23] : memref<24x384xf32, #tpu.memory_space<vmem>>, vector<24x384xf32>
    tpu.vector_store %arg8[%c0_22, %c0_23], %62 {strides = array<i32>} : memref<24x384xf32, #tpu.memory_space<vmem>>, vector<24x384xf32>,
    return
  }
  func.func @transform_0(%arg0: i32) -> (i32, i32) {
    %c0_i32 = arith.constant 0 : i32
    %c0_i32_0 = arith.constant 0 : i32
    return %arg0, %c0_i32 : i32, i32
  }
  func.func @transform_1(%arg0: i32) -> (i32, i32) {
    %c0_i32 = arith.constant 0 : i32
    %c0_i32_0 = arith.constant 0 : i32
    %c0_i32_1 = arith.constant 0 : i32
    return %c0_i32, %c0_i32_0 : i32, i32
  }
  func.func @transform_2(%arg0: i32) -> (i32, i32) {
    %c0_i32 = arith.constant 0 : i32
    %c0_i32_0 = arith.constant 0 : i32
    %c0_i32_1 = arith.constant 0 : i32
    return %c0_i32, %c0_i32_0 : i32, i32
  }
  func.func @transform_3(%arg0: i32) -> (i32, i32) {
    %c0_i32 = arith.constant 0 : i32
    %c0_i32_0 = arith.constant 0 : i32
    %c0_i32_1 = arith.constant 0 : i32
    return %c0_i32, %c0_i32_0 : i32, i32
  }
  func.func @transform_4(%arg0: i32) -> (i32, i32) {
    %c0_i32 = arith.constant 0 : i32
    %c0_i32_0 = arith.constant 0 : i32
    %c0_i32_1 = arith.constant 0 : i32
    return %c0_i32, %c0_i32_0 : i32, i32
  }
  func.func @transform_5(%arg0: i32) -> (i32, i32) {
    %c0_i32 = arith.constant 0 : i32
    %c0_i32_0 = arith.constant 0 : i32
    %c0_i32_1 = arith.constant 0 : i32
    return %c0_i32, %c0_i32_0 : i32, i32
  }
  func.func @transform_6(%arg0: i32) -> (i32, i32) {
    %c0_i32 = arith.constant 0 : i32
    %c0_i32_0 = arith.constant 0 : i32
    %c0_i32_1 = arith.constant 0 : i32
    return %c0_i32, %c0_i32_0 : i32, i32
  }
  func.func @transform_7(%arg0: i32) -> (i32, i32) {
    %c0_i32 = arith.constant 0 : i32
    %c0_i32_0 = arith.constant 0 : i32
    return %arg0, %c0_i32 : i32, i32
  }
}

</mosaic_0001>

<bundles_post_ra>
// kernel: tpu_custom_call.1
= control target key start
LH: loop header
LB: loop body
LE: loop exit
PB: predicated region body
PF: predicated region fallthrough
CT: control target
= control target key end

     0   :  { %s1971_s0 = inlined_call_operand.hbm [shape: bf16[72,256], index: 0, kind: input, shape index: {}]   ;;  %s1972_s1 = inlined_call_operand.hbm [shape: bf16[256,128], index: 1, kind: input, shape index: {}]   ;;  %s1973_s2 = inlined_call_operand.vmem [shape: f32[1,128], index: 2, kind: input, shape index: {}]   ;;  %s1974_s3 = inlined_call_operand.hbm [shape: bf16[128,128], index: 3, kind: input, shape index: {}]   ;;  %s1975_s4 = inlined_call_operand.hbm [shape: f32[1,128], index: 4, kind: input, shape index: {}]   ;;  %s1976_s5 = inlined_call_operand.hbm [shape: bf16[128,256], index: 5, kind: input, shape index: {}]   ;;  %s1977_s6 = inlined_call_operand.vmem [shape: f32[1,256], index: 6, kind: input, shape index: {}]   ;;  %s1978_s7 = inlined_call_operand.hbm [shape: f32[72,384], index: 7, kind: output, shape index: {}]  }
   0x1   :  { %1981 = sst [smem:[#allocation16_spill]] %s1972_s1 }
   0x2   :  { %1982 = sst [smem:[#allocation17_spill]] %s1974_s3 }
   0x3   :  { %1983 = sst [smem:[#allocation18_spill]] %s1975_s4 }
   0x4   :  { %12 = vsyncpa [#allocation3], 0 }
   0x5   :  { %14 = vsyncpa [#allocation3 + $0x1], 0 }
   0x6   :  { %15 = vsyncpa [#allocation6], 0 }
   0x7   :  { %16 = vsyncpa [#allocation9], 0 }
   0x8   :  { %17 = vsyncpa [#allocation4], 0 }
   0x9   :  { %19 = vsyncpa [#allocation4 + $0x1], 0  ;;  %s1755_s24 = smov 0   ;;  %s1757_s25 = smov 0  }
   0xa   :  { %s1759_s26 = smov 0   ;;  %s1761_s27 = smov 0  }
   0xb LB: > { %s1776_s28 = sadd.s32 4294967295, %s1703_s27   ;;  %s1105_s29 = sadd.s32 4294967294, %s1703_s27   ;;  %s1703_s27 = sphi %s1761_s27, %s1998_s27   ;;  %s1699_s26 = sphi %s1759_s26, %s1997_s26   ;;  %s1695_s25 = sphi %s1757_s25, %s1996_s25   ;;  %s1691_s24 = sphi %s1755_s24, %s1995_s24  }
   0xc   : > { %p45_p0 = scmp.ne.s32.totalorder %s1695_s25, %s1691_s24  ;;  %p46_p1 = scmp.eq.s32.totalorder %s1776_s28, 0 }
   0xd   : > { %p195_p2 = scmp.eq.s32.totalorder %s1776_s28, 2  ;;  %p201_p3 = scmp.eq.s32.totalorder %s1105_s29, 2 }
   0xe   : > { %p1785_p4 = por %p46_p1, %p45_p0  ;;  %p1106_p5 = scmp.ge.s32.totalorder %s1703_s27, 1 }
   0xf   : > { %p1790_p6 = por %p201_p3, %p45_p0  ;;  %p208_p7 = scmp.lt.s32.totalorder %s1703_s27, 4 }
  0x10   : > { %s1986_s1 = sld [smem:[#allocation16_spill]]  ;;  %s1705_s13 = smov [#allocation5]  }
  0x11   : > { %p1798_p8 = pnand %p1106_p5, %p208_p7  ;;  %s221_s14 = sshll.u32 %s1705_s13, 4  ;;  %s222_s14 = int_to_ptr.vmem [resolvable:$true] %s221_s14 }
  0x12   : > { %s1989_s4 = sld [smem:[#allocation18_spill]]  ;;  %s1706_s19 = smov 64  }
  0x13   : > { %p1367_p9 = pneg %p1798_p8  ;;  %s1707_s20 = smov 4  }
  0x14   : > { %s1708_s21 = smov [#allocation8]   ;;  %s1990_s3 = sld [smem:[#allocation17_spill]] }
  0x15   : > { %p1806_p10 = pnand %p1367_p9, %p46_p1  ;;  %s253_s22 = sshll.u32 %s1708_s21, 4  ;;  %s254_s22 = int_to_ptr.vmem [resolvable:$true] %s253_s22 }
  0x16   : > { %s219_s11 = sshll.u32 %s1986_s1, 4  ;;  %s262_s16 = sshll.u32 %s1976_s5, 4  ;;  %s220_s11 = int_to_ptr.hbm [resolvable:$true] %s219_s11  ;;  %s263_s16 = int_to_ptr.hbm [resolvable:$true] %s262_s16 }
  0x17   : > { %1370 = dma.hbm_to_vmem [thread:$0]  (!%p1806_p10), %s220_s11, 2048, %s222_s14, [#allocation6], %s1706_s19, %s1706_s19, %s1707_s20  }
  0x18   : > { %s251_s18 = sshll.u32 %s1989_s4, 4  ;;  %s1709_s11 = smov [#allocation7]   ;;  %s252_s18 = int_to_ptr.hbm [resolvable:$true] %s251_s18 }
  0x19   : > { %1376 = dma.hbm_to_vmem [thread:$0]  (!%p1806_p10), %s252_s18, 16, %s254_s22, [#allocation9]  }
  0x1a   : > { %s236_s9 = sshll.u32 %s1990_s3, 4  ;;  %s238_s14 = sshll.u32 %s1709_s11, 4  ;;  %s237_s9 = int_to_ptr.hbm [resolvable:$true] %s236_s9  ;;  %s239_s14 = int_to_ptr.vmem [resolvable:$true] %s238_s14 }
  0x1b   : > { %1373 = dma.hbm_to_vmem [thread:$0]  (!%p1806_p10), %s237_s9, 1024, %s239_s14, [#allocation6], %s1706_s19, %s1706_s19, %s1707_s20  }
  0x1c   : > { %s1710_s17 = smov [#allocation10]   ;;  %s1979_s21 = smov 128  }
  0x1d   : > { %s264_s18 = sshll.u32 %s1710_s17, 4  ;;  %s1980_s22 = smov 8   ;;  %s265_s18 = int_to_ptr.vmem [resolvable:$true] %s264_s18 }
  0x1e   : > { %1379 = dma.hbm_to_vmem [thread:$0]  (!%p1806_p10), %s263_s16, 2048, %s265_s18, [#allocation9], %s1979_s21, %s1979_s21, %s1980_s22  }
  0x1f   : > { %s1831_s23 = sadd.s32 1, %s1703_s27   ;;  %s32_s10 = sadd.s32 1, %s1699_s26 }
  0x20   : > { %s29_s29 = ssub.s32 %s1703_s27, %s1831_s23  ;;  %p39_p12 = scmp.ne.s32.totalorder %s1699_s26, %s1695_s25 }
  0x21   : > { %p30_p11 = scmp.eq.s32.totalorder %s29_s29, 0  ;;  %p40_p13 = scmp.eq.s32.totalorder %s1703_s27, 0 }
  0x22   : > { %p1844_p3 = por %p195_p2, %p39_p12  ;;  %p1392_p5 = scmp.lt.s32.totalorder %s1703_s27, 3 }
  0x23   : > { %s1840_s19 = scalar_select %p30_p11, %s1699_s26, %s32_s10  }
  0x24   : > { %p41_p0 = por %p40_p13, %p39_p12  ;;  %s281_s15 = sand.u32 1, %s1699_s26  }
  0x25   : > { %s1343_s9 = smul.u32 24, %s281_s15  ;;  %s282_s21 = scalar_lea.sflag [#allocation3], %s281_s15 }
  0x26   : > { %s1334_s13 = smul.u32 24, %s1703_s27  ;;  %p1851_p7 = pnand %p1392_p5, %p41_p0 }
  0x27   : > { %s285_s18 = scalar_lea.vmem [#allocation2], %s1343_s9  ;;  %s1606_s11 = scalar_lea.hbm %s1971_s0, 72 }
  0x28   : > { %s291_s17 = scalar_lea.hbm %s1971_s0, %s1334_s13  ;;  %s294_s29 = sshll.u32 %s285_s18, 4  ;;  %s295_s29 = int_to_ptr.vmem [resolvable:$true] %s294_s29 }
  0x29   : > { %s292_s10 = sshll.u32 %s291_s17, 4  ;;  %p1603_p9 = pneg %p1851_p7  ;;  %s293_s10 = int_to_ptr.hbm [resolvable:$true] %s292_s10 }
  0x2a   : > { %s1599_s22 = sshra.s32 %s293_s10, 4  ;;  %s1600_s22 = int_to_ptr.hbm [resolvable:$true] %s1599_s22 }
  0x2b   : > { %s1601_s1 = scalar_lea.hbm %s1600_s22, 24  ;;  %p1607_p12 = scmp.lt.s32.totalorder %s1600_s22, %s1971_s0 }
  0x2c   : > { %p1602_p2 = scmp.ne.s32.totalorder %s1600_s22, %s1601_s1  ;;  %p1608_p13 = scmp.lt.s32.totalorder %s1606_s11, %s1601_s1 }
  0x2e   : > { %p1604_p10 = pnand %p1603_p9, %p1602_p2  ;;  %p1609_p0 = por %p1608_p13, %p1607_p12 }
  0x30   : > { %p1605_p11 = pneg %p1604_p10 }
  0x32   : > { %p1610_p5 = pnand %p1609_p0, %p1605_p11 }
  0x34   : > { %1613 = shalt.err (!%p1610_p5)
}
  0x35   : > { %s1993_s15 = smov 8   ;;  %s1994_s9 = smov 128  }
  0x36   : > { %1383 = dma.hbm_to_vmem [thread:$0]  (!%p1851_p7), %s293_s10, 384, %s295_s29, %s282_s21, %s1994_s9, %s1994_s9, %s1993_s15  }
  0x37   : > { %306 = sbr.rel (%p1798_p8) target bundleno = 858 (0x35a), region = 48  ;;  %s1874_s3 = sand.u32 (!%p1798_p8), 1, %s1695_s25  }
  0x38   : > { %s1344_s4 = smul.u32 (!%p1798_p8), 24, %s1874_s3  ;;  %s309_s1 = scalar_lea.sflag (!%p1798_p8), [#allocation3], %s1874_s3 }
  0x3a   : > { %s1878_s22 = scalar_lea.vmem (!%p1798_p8), [#allocation2], %s1344_s4 }
  0x3c   : > { %1674 = dma.done.wait (%p1785_p4), %s309_s1, 384  }
  0x3d   : > { %1676 = vsyncadd (%p1785_p4), %s309_s1, 4294966912 }
  0x3e   : > { %1678 = dma.done.wait (%p46_p1), [#allocation6], 3072  }
  0x3f   : > { %1680 = vsyncadd (%p46_p1), [#allocation6], 4294964224 }
  0x40   : > { %1682 = dma.done.wait (%p46_p1), [#allocation9], 2064  }
  0x41   : > { %1684 = vsyncadd (%p46_p1), [#allocation9], 4294965232  ;;  %v1301_v0 = vld [vmem:[#allocation5 + $0x38] sm:$0xff]  ;;  %v1300_v2 = vld [vmem:[#allocation5 + $0x30] sm:$0xff]  ;;  %s1345_s17 = smul.u32 72, %s1874_s3  ;;  %s978_s15 = scalar_lea.sflag [#allocation4], %s1874_s3 }
  0x42   : > { %v1309_v1 = vld [vmem:[#allocation5 + $0x78] sm:$0xff]  ;;  %518 = vmatpush.bf16.msra.mxu0 %v1301_v0  ;;  %v1308_v3 = vld [vmem:[#allocation5 + $0x70] sm:$0xff]  ;;  %v1299_v4 = vld [vmem:[#allocation5 + $0x28] sm:$0xff]  ;;  %s1397_s29 = smul.u32 72, %s1776_s28  ;;  %s1649_s30 = scalar_lea.hbm %s1978_s7, 216 }
  0x43   : > { %536 = vmatpush.bf16.msra.mxu1 %v1309_v1  ;;  %v1307_v5 = vld [vmem:[#allocation5 + $0x68] sm:$0xff]  ;;  %v1298_v6 = vld [vmem:[#allocation5 + $0x20] sm:$0xff]  ;;  %v1297_v8 = vld [vmem:[#allocation5 + $0x18] sm:$0xff]  ;;  %s1924_s18 = scalar_lea.vmem [#allocation11], %s1345_s17 }
  0x44   : > { %v1306_v7 = vld [vmem:[#allocation5 + $0x60] sm:$0xff]  ;;  %v1305_v9 = vld [vmem:[#allocation5 + $0x58] sm:$0xff]  ;;  %v1296_v10 = vld [vmem:[#allocation5 + $0x10] sm:$0xff]  ;;  %s990_s14 = scalar_lea.hbm %s1978_s7, %s1397_s29  ;;  %s991_s13 = sshll.u32 %s1924_s18, 4  ;;  %s992_s13 = int_to_ptr.vmem [resolvable:$true] %s991_s13 }
  0x45   : > { %v1304_v11 = vld [vmem:[#allocation5 + $0x50] sm:$0xff]  ;;  %v1295_v12 = vld [vmem:[#allocation5 + $0x8] sm:$0xff]  ;;  %v1294_v14 = vld [vmem:[#allocation5] sm:$0xff]  ;;  %s993_s28 = sshll.u32 %s990_s14, 4  ;;  %s994_s28 = int_to_ptr.hbm [resolvable:$true] %s993_s28 }
  0x46   : > { %519 = vmatpush.bf16.msra.mxu0 %v1300_v2  ;;  %v1303_v13 = vld [vmem:[#allocation5 + $0x48] sm:$0xff]  ;;  %v1302_v15 = vld [vmem:[#allocation5 + $0x40] sm:$0xff]  ;;  %v1293_v17 = vld [vmem:[%s1878_s22 + $0x4] sm:$0xf0]  ;;  %s1643_s9 = sshra.s32 %s994_s28, 4  ;;  %s1644_s9 = int_to_ptr.hbm [resolvable:$true] %s1643_s9 }
  0x47   : > { %537 = vmatpush.bf16.msra.mxu1 %v1308_v3  ;;  %v1121_v16 = vld [vmem:[%s1878_s22] sm:$0xf]  ;;  %v1292_v18 = vld [vmem:[%s1878_s22 + $0x4] sm:$0xf]  ;;  %v1123_v19 = vld [vmem:[%s1878_s22 + $0x8] sm:$0xf0]  ;;  %p1650_p7 = scmp.lt.s32.totalorder %s1644_s9, %s1978_s7 }
  0x48   : > { %v1122_v20 = vor.u32 %v1293_v17, %v1121_v16  ;;  %v1126_v21 = vor.u32 %v1292_v18, %v1123_v19  ;;  %v368_v22 = vld [vmem:[%s1878_s22 + $0x10] sm:$0xff]  ;;  %v1316_v28 = vld [vmem:[#allocation7 + $0x30] sm:$0xff]  ;;  %v1315_v29 = vld [vmem:[#allocation7 + $0x28] sm:$0xff]  ;;  %s1645_s4 = scalar_lea.hbm %s1644_s9, 72 }
  0x49   : > { %v412_v23 = vunpack.c.l.b16 %v368_v22  ;;  %v413_v24 = vunpack.c.h.b16 %v368_v22  ;;  %v1317_v27 = vld [vmem:[#allocation7 + $0x38] sm:$0xff]  ;;  %v1314_v30 = vld [vmem:[#allocation7 + $0x20] sm:$0xff]  ;;  %v1441_v32 = vld [vmem:[%s1973_s2] ss:$0 sm:$0xff]  ;;  %p1646_p1 = scmp.ne.s32.totalorder %s1644_s9, %s1645_s4  ;;  %p1651_p2 = scmp.lt.s32.totalorder %s1649_s30, %s1645_s4 }
  0x4a   : > { %520 = vmatpush.bf16.msra.mxu0 %v1299_v4  ;;  %681 = vmatpush.bf16.msra.mxu2 %v1317_v27  ;;  %v1313_v31 = vld [vmem:[#allocation7 + $0x18] sm:$0xff]  ;;  %v1312_v33 = vld [vmem:[#allocation7 + $0x10] sm:$0xff]  ;;  %v1311_v37 = vld [vmem:[#allocation7 + $0x8] sm:$0xff] }
  0x4b   : > { %538 = vmatpush.bf16.msra.mxu1 %v1307_v5  ;;  %v416_v25 = vpack.c.b16 %v412_v23, %v412_v23  ;;  %v417_v26 = vpack.c.b16 %v413_v24, %v413_v24  ;;  %v1310_v40 = vld [vmem:[#allocation7] sm:$0xff]  ;;  %p1647_p4 = pnand %p1646_p1, %p1844_p3  ;;  %p1652_p9 = por %p1651_p2, %p1650_p7 }
  0x4d   : > { %p1648_p8 = pneg %p1647_p4 }
  0x4e   : > { %521 = vmatpush.bf16.msra.mxu0 %v1298_v6  ;;  %682 = vmatpush.bf16.msra.mxu2 %v1316_v28 }
  0x4f   : > { %539 = vmatpush.bf16.msra.mxu1 %v1306_v7  ;;  %p1653_p10 = pnand %p1652_p9, %p1648_p8 }
  0x52   : > { %522 = vmatpush.bf16.msra.mxu0 %v1297_v8  ;;  %683 = vmatpush.bf16.msra.mxu2 %v1315_v29 }
  0x53   : > { %540 = vmatpush.bf16.msra.mxu1 %v1305_v9 }
  0x56   : > { %523 = vmatpush.bf16.msra.mxu0 %v1296_v10  ;;  %684 = vmatpush.bf16.msra.mxu2 %v1314_v30 }
  0x57   : > { %541 = vmatpush.bf16.msra.mxu1 %v1304_v11 }
  0x5a   : > { %524 = vmatpush.bf16.msra.mxu0 %v1295_v12  ;;  %685 = vmatpush.bf16.msra.mxu2 %v1313_v31 }
  0x5b   : > { %542 = vmatpush.bf16.msra.mxu1 %v1303_v13 }
  0x5e   : > { %525 = vmatpush.bf16.msra.mxu0 %v1294_v14  ;;  %686 = vmatpush.bf16.msra.mxu2 %v1312_v33 }
  0x5f   : > { %543 = vmatpush.bf16.msra.mxu1 %v1302_v15 }
  0x61   : > { %526 = vmatmul.bf16.vlgmr.msra.gmra.mxu0 %v1122_v20 }
  0x62   : > { %544 = vmatmul.bf16.vlgmr.msra.gmra.mxu1 %v1126_v21  ;;  %687 = vmatpush.bf16.msra.mxu2 %v1311_v37  ;;  %v1333_v37 = vld [vmem:[#allocation10 + $0x74] sm:$0xf0] }
  0x66   : > { %688 = vmatpush.bf16.msra.mxu2 %v1310_v40 }
  0x71   : > { %531 = vmatmul.bf16.gmra.mxu0 %v416_v25 }
  0x72   : > { %549 = vmatmul.bf16.gmra.mxu1 %v417_v26 }
  0xde   : > { %v527_v34 = vpop.f32.mrf.mxu0 }
  0xdf   : > { %v545_v35 = vpop.f32.mrf.mxu1  ;;  %v528_v36 = vadd.f32 %v1441_v32, %v527_v34 }
  0xe1   : > { %v1900_v38 = vadd.f32 %v545_v35, %v528_v36  ;;  %v1281_v36 = vld [vmem:[#allocation10 + $0x70] sm:$0xf] }
  0xe2   : > { %v1282_v40 = vor.u32 %v1333_v37, %v1281_v36 }
  0xe3   : > { %v1903_v39 = vsub.f32 0.0, %v1900_v38  ;;  %v554_v14 = vmax.f32 %v1900_v38, 0.0 }
  0xe4   : > { %860 = vmatpush.bf16.msra.mxu3 %v1282_v40 }
  0xe5   : > { %v566_v41 = vand.u32 2147483647, %v1903_v39  ;;  %vm560_vm2 = vcmp.ne.f32.partialorder %v1903_v39, %v1903_v39  ;;  %v1332_v39 = vld [vmem:[#allocation10 + $0x74] sm:$0xf] }
  0xe6   : > { %v529_v42 = vpop.f32.mrf.mxu0 }
  0xe7   : > { %v547_v43 = vpop.f32.mrf.mxu1  ;;  %v569_v44 = vsub.f32 0.0, %v566_v41  ;;  %v530_v45 = vadd.f32 %v1441_v32, %v529_v42  ;;  %v1273_v42 = vld [vmem:[#allocation10 + $0x60] sm:$0xf] }
  0xe9   : > { %v572_v46 = vmul.f32 1.442695, %v569_v44  ;;  %v548_v47 = vadd.f32 %v547_v43, %v530_v45  ;;  %v1331_v43 = vld [vmem:[#allocation10 + $0x64] sm:$0xf0]  ;;  %v1330_v44 = vld [vmem:[#allocation10 + $0x64] sm:$0xf] }
  0xea   : > { %v1274_v45 = vor.u32 %v1331_v43, %v1273_v42 }
  0xeb   : > { %1443 = vpow2.f32 %v572_v46  ;;  %v558_v48 = vsub.f32 0.0, %v548_v47  ;;  %v555_v19 = vmax.f32 %v548_v47, 0.0  ;;  %v1275_v46 = vld [vmem:[#allocation10 + $0x68] sm:$0xf0] }
  0xec   : > { %861 = vmatpush.bf16.msra.mxu3 %v1274_v45 }
  0xed   : > { %v567_v49 = vand.u32 2147483647, %v558_v48  ;;  %vm561_vm3 = vcmp.ne.f32.partialorder %v558_v48, %v558_v48  ;;  %v1265_v48 = vld [vmem:[#allocation10 + $0x50] sm:$0xf] }
  0xee   : > { %v532_v50 = vpop.f32.mrf.mxu0 }
  0xef   : > { %v550_v51 = vpop.f32.mrf.mxu1  ;;  %v570_v52 = vsub.f32 0.0, %v567_v49  ;;  %v533_v53 = vadd.f32 %v1441_v32, %v532_v50  ;;  %v1329_v49 = vld [vmem:[#allocation10 + $0x54] sm:$0xf0]  ;;  %v1328_v50 = vld [vmem:[#allocation10 + $0x54] sm:$0xf] }
  0xf1   : > { %v1444_v54 = vpop.eup %1443  ;;  %v574_v55 = vmul.f32 1.442695, %v570_v52  ;;  %v551_v56 = vadd.f32 %v550_v51, %v533_v53  ;;  %v1266_v51 = vor.u32 %v1329_v49, %v1265_v48  ;;  %v1267_v52 = vld [vmem:[#allocation10 + $0x58] sm:$0xf0] }
  0xf2   : > { %v578_v57 = vadd.f32 1.0, %v1444_v54  ;;  %v581_v63 = vmul.f32 -0.5, %v1444_v54  ;;  %v584_v6 = vand.u32 2147483647, %v1444_v54  ;;  %v1270_v53 = vor.u32 %v1328_v50, %v1267_v52 }
  0xf3   : > { %1445 = vpow2.f32 %v574_v55  ;;  %v559_v58 = vsub.f32 0.0, %v551_v56  ;;  %v556_v32 = vmax.f32 %v551_v56, 0.0  ;;  %862 = vmatpush.bf16.msra.mxu3 %v1266_v51  ;;  %v1327_v55 = vld [vmem:[#allocation10 + $0x44] sm:$0xf0] }
  0xf4   : > { %1447 = vlog2.f32 %v578_v57  ;;  %v582_v4 = vadd.f32 1.0, %v581_v63  ;;  %vm585_vm0 = vcmp.lt.f32.partialorder %v584_v6, 0.0004427343 }
  0xf5   : > { %v568_v59 = vand.u32 2147483647, %v559_v58  ;;  %vm562_vm5 = vcmp.ne.f32.partialorder %v559_v58, %v559_v58  ;;  %v1259_v58 = vld [vmem:[#allocation10 + $0x48] sm:$0xf0] }
  0xf6   : > { %v534_v60 = vpop.f32.mrf.mxu0  ;;  %v583_v8 = vmul.f32 %v1444_v54, %v582_v4  ;;  %v1257_v54 = vld [vmem:[#allocation10 + $0x40] sm:$0xf]  ;;  %v1323_v4 = vld [vmem:[#allocation10 + $0x24] sm:$0xf0] }
  0xf7   : > { %v552_v61 = vpop.f32.mrf.mxu1  ;;  %v571_v62 = vsub.f32 0.0, %v568_v59  ;;  %v1258_v57 = vor.u32 %v1327_v55, %v1257_v54  ;;  %v1249_v60 = vld [vmem:[#allocation10 + $0x30] sm:$0xf] }
  0xf8   : > { %v1325_v61 = vld [vmem:[#allocation10 + $0x34] sm:$0xf0] }
  0xf9   : > { %v1446_v0 = vpop.eup %1445  ;;  %v576_v1 = vmul.f32 1.442695, %v571_v62  ;;  %863 = vmatpush.bf16.msra.mxu3 %v1258_v57  ;;  %v1324_v62 = vld [vmem:[#allocation10 + $0x34] sm:$0xf]  ;;  %v1250_v63 = vor.u32 %v1325_v61, %v1249_v60 }
  0xfa   : > { %v1448_v2 = vpop.eup %1447  ;;  %v587_v3 = vadd.f32 1.0, %v1446_v0  ;;  %v590_v5 = vmul.f32 -0.5, %v1446_v0  ;;  %v593_v10 = vand.u32 2147483647, %v1446_v0 }
  0xfb   : > { %1449 = vpow2.f32 %v576_v1  ;;  %v580_v7 = vmul.f32 0.6931472, %v1448_v2  ;;  %v1442_v2 = vld [vmem:[#allocation8] ss:$0 sm:$0xff] }
  0xfc   : > { %1451 = vlog2.f32 %v587_v3  ;;  %v591_v9 = vadd.f32 1.0, %v590_v5  ;;  %vm594_vm1 = vcmp.lt.f32.partialorder %v593_v10, 0.0004427343  ;;  %v1241_v3 = vld [vmem:[#allocation10 + $0x20] sm:$0xf] }
  0xfd   : > { %v586_v12 = vsel %vm585_vm0, %v583_v8, %v580_v7  ;;  %864 = vmatpush.bf16.msra.mxu3 %v1250_v63  ;;  %v1322_v5 = vld [vmem:[#allocation10 + $0x24] sm:$0xf]  ;;  %v1242_v6 = vor.u32 %v1323_v4, %v1241_v3  ;;  %v1243_v7 = vld [vmem:[#allocation10 + $0x28] sm:$0xf0] }
  0xfe   : > { %v592_v17 = vmul.f32 %v1446_v0, %v591_v9  ;;  %v605_v20 = vadd.f32 %v586_v12, %v554_v14  ;;  %v1251_v0 = vld [vmem:[#allocation10 + $0x38] sm:$0xf0]  ;;  %v1246_v8 = vor.u32 %v1322_v5, %v1243_v7  ;;  %v1321_v12 = vld [vmem:[#allocation10 + $0x14] sm:$0xf0] }
  0xff   : > { %v1254_v1 = vor.u32 %v1324_v62, %v1251_v0 }
 0x100   : > { %v608_v24 = vsel %vm560_vm2, %v1900_v38, %v605_v20  ;;  %v1283_v38 = vld [vmem:[#allocation10 + $0x78] sm:$0xf0]  ;;  %v1319_v20 = vld [vmem:[#allocation10 + $0x4] sm:$0xf0] }
 0x101   : > { %v1450_v11 = vpop.eup %1449  ;;  %v1286_v41 = vor.u32 %v1332_v39, %v1283_v38  ;;  %865 = vmatpush.bf16.msra.mxu3 %v1242_v6 }
 0x102   : > { %v1452_v13 = vpop.eup %1451  ;;  %v596_v15 = vadd.f32 1.0, %v1450_v11  ;;  %v599_v18 = vmul.f32 -0.5, %v1450_v11  ;;  %v602_v26 = vand.u32 2147483647, %v1450_v11 }
 0x103   : > { %v589_v16 = vmul.f32 0.6931472, %v1452_v13  ;;  %878 = vmatpush.bf16.msrb.mxu0 %v1286_v41  ;;  %1335 = vmatpush.bf16.msrb.mxu1 %v1286_v41  ;;  %v1320_v13 = vld [vmem:[#allocation10 + $0x14] sm:$0xf] }
 0x104   : > { %1453 = vlog2.f32 %v596_v15  ;;  %v600_v23 = vadd.f32 1.0, %v599_v18  ;;  %vm603_vm4 = vcmp.lt.f32.partialorder %v602_v26, 0.0004427343  ;;  %v1235_v15 = vld [vmem:[#allocation10 + $0x18] sm:$0xf0] }
 0x105   : > { %v595_v21 = vsel %vm594_vm1, %v592_v17, %v589_v16  ;;  %v1238_v17 = vor.u32 %v1320_v13, %v1235_v15 }
 0x106   : > { %v606_v22 = vadd.f32 %v595_v21, %v555_v19  ;;  %v601_v30 = vmul.f32 %v1450_v11, %v600_v23  ;;  %v1233_v11 = vld [vmem:[#allocation10 + $0x10] sm:$0xf]  ;;  %v1225_v19 = vld [vmem:[#allocation10] sm:$0xf]  ;;  %v1227_v23 = vld [vmem:[#allocation10 + $0x8] sm:$0xf0] }
 0x107   : > { %v1234_v14 = vor.u32 %v1321_v12, %v1233_v11  ;;  %v1226_v21 = vor.u32 %v1319_v20, %v1225_v19 }
 0x108   : > { %v609_v25 = vsel %vm561_vm3, %v548_v47, %v606_v22  ;;  %v1278_v47 = vor.u32 %v1330_v44, %v1275_v46  ;;  %v1318_v22 = vld [vmem:[#allocation10 + $0x4] sm:$0xf] }
 0x109   : > { %v611_v27 = vpack.c.bf16 %v609_v25, %v608_v24  ;;  %866 = vmatpush.bf16.msra.mxu3 %v1234_v14  ;;  %v1230_v25 = vor.u32 %v1318_v22, %v1227_v23 }
 0x10a   : > { %v1454_v28 = vpop.eup %1453  ;;  %879 = vmatpush.bf16.msrb.mxu0 %v1278_v47  ;;  %1336 = vmatpush.bf16.msrb.mxu1 %v1278_v47 }
 0x10b   : > { %689 = vmatmul.bf16.vlgmr.msra.gmra.mxu2 %v611_v27  ;;  %v598_v29 = vmul.f32 0.6931472, %v1454_v28 }
 0x10d   : > { %v604_v31 = vsel %vm603_vm4, %v601_v30, %v598_v29  ;;  %867 = vmatpush.bf16.msra.mxu3 %v1226_v21 }
 0x10e   : > { %v607_v33 = vadd.f32 %v604_v31, %v556_v32  ;;  %880 = vmatpush.bf16.msrb.mxu0 %v1270_v53  ;;  %1337 = vmatpush.bf16.msrb.mxu1 %v1270_v53 }
 0x110   : > { %v610_v34 = vsel %vm562_vm5, %v551_v56, %v607_v33  ;;  %v1326_v56 = vld [vmem:[#allocation10 + $0x44] sm:$0xf] }
 0x111   : > { %v612_v35 = vpack.c.bf16 %v610_v34, %v610_v34  ;;  %v1262_v59 = vor.u32 %v1326_v56, %v1259_v58 }
 0x113   : > { %881 = vmatpush.bf16.msrb.mxu0 %v1262_v59  ;;  %1338 = vmatpush.bf16.msrb.mxu1 %v1262_v59 }
 0x117   : > { %882 = vmatpush.bf16.msrb.mxu0 %v1254_v1  ;;  %1339 = vmatpush.bf16.msrb.mxu1 %v1254_v1 }
 0x11b   : > { %694 = vmatmul.bf16.gmra.mxu2 %v612_v35  ;;  %883 = vmatpush.bf16.msrb.mxu0 %v1246_v8 }
 0x11c   : > { %1340 = vmatpush.bf16.msrb.mxu1 %v1246_v8 }
 0x11f   : > { %884 = vmatpush.bf16.msrb.mxu0 %v1238_v17 }
 0x120   : > { %1341 = vmatpush.bf16.msrb.mxu1 %v1238_v17 }
 0x123   : > { %885 = vmatpush.bf16.msrb.mxu0 %v1230_v25 }
 0x124   : > { %1342 = vmatpush.bf16.msrb.mxu1 %v1230_v25 }
 0x18e   : > { %v690_v9 = vpop.f32.mrf.mxu2 }
 0x18f   : > { %v1910_v10 = vadd.f32 %v1442_v2, %v690_v9 }
 0x191   : > { %v1913_v16 = vsub.f32 0.0, %v1910_v10  ;;  %v699_v56 = vmax.f32 %v1910_v10, 0.0 }
 0x193   : > { %v711_v18 = vand.u32 2147483647, %v1913_v16  ;;  %vm705_vm8 = vcmp.ne.f32.partialorder %v1913_v16, %v1913_v16  ;;  %v896_v16 = vlaneseq }
 0x195   : > { %v714_v24 = vsub.f32 0.0, %v711_v18  ;;  %v897_v19 = vand.u32 127, %v896_v16 }
 0x196   : > { %v692_v26 = vpop.f32.mrf.mxu2 }
 0x197   : > { %v717_v27 = vmul.f32 1.442695, %v714_v24  ;;  %v693_v28 = vadd.f32 %v1442_v2, %v692_v26  ;;  %vm898_vm12 = vcmp.lt.s32.totalorder %v897_v19, 32 }
 0x199   : > { %1455 = vpow2.f32 %v717_v27  ;;  %v703_v29 = vsub.f32 0.0, %v693_v28  ;;  %v700_v61 = vmax.f32 %v693_v28, 0.0 }
 0x19b   : > { %v712_v30 = vand.u32 2147483647, %v703_v29  ;;  %vm706_vm9 = vcmp.ne.f32.partialorder %v703_v29, %v703_v29 }
 0x19d   : > { %v715_v31 = vsub.f32 0.0, %v712_v30 }
 0x19e   : > { %v695_v32 = vpop.f32.mrf.mxu2 }
 0x19f   : > { %v1456_v33 = vpop.eup %1455  ;;  %v719_v34 = vmul.f32 1.442695, %v715_v31  ;;  %v696_v35 = vadd.f32 %v1442_v2, %v695_v32 }
 0x1a0   : > { %v723_v36 = vadd.f32 1.0, %v1456_v33  ;;  %v726_v38 = vmul.f32 -0.5, %v1456_v33  ;;  %v729_v48 = vand.u32 2147483647, %v1456_v33 }
 0x1a1   : > { %1457 = vpow2.f32 %v719_v34  ;;  %v704_v37 = vsub.f32 0.0, %v696_v35  ;;  %v701_v9 = vmax.f32 %v696_v35, 0.0 }
 0x1a2   : > { %1459 = vlog2.f32 %v723_v36  ;;  %v727_v46 = vadd.f32 1.0, %v726_v38  ;;  %vm730_vm6 = vcmp.lt.f32.partialorder %v729_v48, 0.0004427343 }
 0x1a3   : > { %v713_v39 = vand.u32 2147483647, %v704_v37  ;;  %vm707_vm11 = vcmp.ne.f32.partialorder %v704_v37, %v704_v37 }
 0x1a4   : > { %v728_v50 = vmul.f32 %v1456_v33, %v727_v46 }
 0x1a5   : > { %v716_v40 = vsub.f32 0.0, %v713_v39 }
 0x1a6   : > { %v697_v41 = vpop.f32.mrf.mxu2 }
 0x1a7   : > { %v1458_v42 = vpop.eup %1457  ;;  %v721_v43 = vmul.f32 1.442695, %v716_v40 }
 0x1a8   : > { %v1460_v44 = vpop.eup %1459  ;;  %v732_v45 = vadd.f32 1.0, %v1458_v42  ;;  %v735_v47 = vmul.f32 -0.5, %v1458_v42  ;;  %v738_v52 = vand.u32 2147483647, %v1458_v42 }
 0x1a9   : > { %1461 = vpow2.f32 %v721_v43  ;;  %v725_v49 = vmul.f32 0.6931472, %v1460_v44 }
 0x1aa   : > { %1463 = vlog2.f32 %v732_v45  ;;  %v736_v51 = vadd.f32 1.0, %v735_v47  ;;  %vm739_vm7 = vcmp.lt.f32.partialorder %v738_v52, 0.0004427343 }
 0x1ab   : > { %v731_v54 = vsel %vm730_vm6, %v728_v50, %v725_v49 }
 0x1ac   : > { %v737_v60 = vmul.f32 %v1458_v42, %v736_v51  ;;  %v750_v62 = vadd.f32 %v731_v54, %v699_v56 }
 0x1ae   : > { %v753_v3 = vsel %vm705_vm8, %v1910_v10, %v750_v62  ;;  %v774_v10 = vld [vmem:[%s1977_s6] sm:$0x3] }
 0x1af   : > { %v1462_v53 = vpop.eup %1461  ;;  %v777_v15 = vperm.slane %v774_v10, 1  ;;  %v776_v20 = vperm.slane %v774_v10, 0 }
 0x1b0   : > { %v1464_v55 = vpop.eup %1463  ;;  %v741_v57 = vadd.f32 1.0, %v1462_v53  ;;  %v744_v58 = vmul.f32 -0.5, %v1462_v53  ;;  %v747_v2 = vand.u32 2147483647, %v1462_v53 }
 0x1b1   : > { %v734_v59 = vmul.f32 0.6931472, %v1464_v55 }
 0x1b2   : > { %1465 = vlog2.f32 %v741_v57  ;;  %v745_v1 = vadd.f32 1.0, %v744_v58  ;;  %vm748_vm10 = vcmp.lt.f32.partialorder %v747_v2, 0.0004427343 }
 0x1b3   : > { %v740_v63 = vsel %vm739_vm7, %v737_v60, %v734_v59 }
 0x1b4   : > { %v751_v0 = vadd.f32 %v740_v63, %v700_v61  ;;  %v746_v8 = vmul.f32 %v1462_v53, %v745_v1 }
 0x1b6   : > { %v754_v4 = vsel %vm706_vm9, %v693_v28, %v751_v0 }
 0x1b7   : > { %v756_v5 = vpack.c.bf16 %v754_v4, %v753_v3 }
 0x1b8   : > { %v1466_v6 = vpop.eup %1465 }
 0x1b9   : > { %v743_v7 = vmul.f32 0.6931472, %v1466_v6  ;;  %868 = vmatmul.bf16.vlgmr.msra.gmra.mxu3 %v756_v5  ;;  %886 = vmatmul.bf16.vlgmr.msrb.gmra.mxu0 %v756_v5 }
 0x1bb   : > { %v749_v11 = vsel %vm748_vm10, %v746_v8, %v743_v7 }
 0x1bc   : > { %v752_v12 = vadd.f32 %v749_v11, %v701_v9 }
 0x1be   : > { %v755_v13 = vsel %vm707_vm11, %v696_v35, %v752_v12 }
 0x1bf   : > { %v757_v14 = vpack.c.bf16 %v755_v13, %v755_v13 }
 0x1c1   : > { %891 = vmatmul.bf16.vlgmr.msrb.gmra.mxu1 %v757_v14 }
 0x1c9   : > { %873 = vmatmul.bf16.gmra.mxu3 %v757_v14 }
 0x236   : > { %v887_v17 = vpop.f32.mrf.mxu0 }
 0x237   : > { %v888_v18 = vadd.f32 %v887_v17, %v777_v15 }
 0x239   : > { %970 = vst [vmem:[%s1924_s18 + $0x10] sm:$0xff] %v888_v18 }
 0x23c   : > { %v869_v21 = vpop.f32.mrf.mxu3 }
 0x23d   : > { %v870_v22 = vadd.f32 %v869_v21, %v776_v20 }
 0x23e   : > { %v889_v23 = vpop.f32.mrf.mxu0  ;;  %v892_v24 = vpop.f32.mrf.mxu1 }
 0x23f   : > { %969 = vst [vmem:[%s1924_s18 + $0x8] sm:$0xff] %v870_v22  ;;  %v890_v25 = vadd.f32 %v889_v23, %v777_v15  ;;  %v893_v26 = vadd.f32 %v892_v24, %v777_v15  ;;  %v899_v27 = vsel %vm898_vm12, %v870_v22, -1e+30 }
 0x240   : > { %902 = vmax.xlane.f32.xlu0 %v899_v27 }
 0x241   : > { %973 = vst [vmem:[%s1924_s18 + $0x28] sm:$0xff] %v890_v25 }
 0x242   : > { %976 = vst [vmem:[%s1924_s18 + $0x40] sm:$0xff] %v893_v26 }
 0x244   : > { %v871_v28 = vpop.f32.mrf.mxu3 }
 0x245   : > { %v872_v29 = vadd.f32 %v871_v28, %v776_v20 }
 0x246   : > { %v894_v30 = vpop.f32.mrf.mxu1 }
 0x247   : > { %972 = vst [vmem:[%s1924_s18 + $0x20] sm:$0xff] %v872_v29  ;;  %v900_v31 = vsel %vm898_vm12, %v872_v29, -1e+30 }
 0x248   : > { %904 = vmax.xlane.f32.xlu0 %v900_v31 }
 0x24c   : > { %v874_v32 = vpop.f32.mrf.mxu3 }
 0x24d   : > { %v875_v33 = vadd.f32 %v874_v32, %v776_v20 }
 0x24f   : > { %975 = vst [vmem:[%s1924_s18 + $0x38] sm:$0xff] %v875_v33  ;;  %v901_v34 = vsel %vm898_vm12, %v875_v33, -1e+30 }
 0x250   : > { %906 = vmax.xlane.f32.xlu1 %v901_v34 }
 0x254   : > { %v876_v35 = vpop.f32.mrf.mxu3 }
 0x2b3   : > { %v903_v36 = vpop.xlane.xlu0 %902 }
 0x2b4   : > { %v908_v37 = vsub.f32 %v899_v27, %v903_v36 }
 0x2b6   : > { %v911_v39 = vmul.f32 1.442695, %v908_v37 }
 0x2b8   : > { %1467 = vpow2.f32 %v911_v39 }
 0x2bb   : > { %v905_v40 = vpop.xlane.xlu0 %904 }
 0x2bc   : > { %v909_v38 = vsub.f32 %v900_v31, %v905_v40 }
 0x2be   : > { %v1468_v41 = vpop.eup %1467  ;;  %v913_v42 = vmul.f32 1.442695, %v909_v38 }
 0x2bf   : > { %917 = vadd.xlane.f32.xlu1 %v1468_v41 }
 0x2c0   : > { %1469 = vpow2.f32 %v913_v42 }
 0x2c3   : > { %v907_v43 = vpop.xlane.xlu1 %906 }
 0x2c4   : > { %v910_v44 = vsub.f32 %v901_v34, %v907_v43 }
 0x2c6   : > { %v1470_v45 = vpop.eup %1469  ;;  %v915_v46 = vmul.f32 1.442695, %v910_v44 }
 0x2c7   : > { %919 = vadd.xlane.f32.xlu2 %v1470_v45 }
 0x2c8   : > { %1471 = vpow2.f32 %v915_v46 }
 0x2ce   : > { %v1472_v47 = vpop.eup %1471 }
 0x2cf   : > { %921 = vadd.xlane.f32.xlu2 %v1472_v47 }
 0x332   : > { %v918_v48 = vpop.xlane.xlu1 %917 }
 0x333   : > { %1473 = vrcp.f32 %v918_v48  ;;  %v934_v53 = vand.u32 2147483648, %v918_v48  ;;  %v932_v55 = vand.u32 2147483647, %v918_v48  ;;  %vm928_vm14 = vweird.f32 %v918_v48 }
 0x335   : > { %v935_v58 = vor.u32 1.1754944e-38, %v934_v53  ;;  %vm933_vm0 = vcmp.eq.f32.partialorder %v932_v55, 8.507059e+37 }
 0x339   : > { %v1474_v49 = vpop.eup %1473 }
 0x33a   : > { %v924_v50 = vmul.f32 %v1474_v49, %v918_v48  ;;  %v920_v51 = vpop.xlane.xlu2 %919  ;;  %vm929_vm13 = vweird.f32 %v1474_v49 }
 0x33b   : > { %1475 = vrcp.f32 %v920_v51  ;;  %vm930_vm15 = vmor %vm928_vm14, %vm929_vm13  ;;  %v949_v1 = vand.u32 2147483648, %v920_v51  ;;  %v947_v3 = vand.u32 2147483647, %v920_v51  ;;  %vm943_vm2 = vweird.f32 %v920_v51 }
 0x33c   : > { %v925_v52 = vsub.f32 1.0, %v924_v50 }
 0x33d   : > { %v950_v6 = vor.u32 1.1754944e-38, %v949_v1  ;;  %vm948_vm4 = vcmp.eq.f32.partialorder %v947_v3, 8.507059e+37 }
 0x33e   : > { %v926_v54 = vmul.f32 %v1474_v49, %v925_v52 }
 0x340   : > { %v927_v56 = vadd.f32 %v1474_v49, %v926_v54 }
 0x341   : > { %v1476_v57 = vpop.eup %1475 }
 0x342   : > { %v931_v59 = vsel %vm930_vm15, %v1474_v49, %v927_v56  ;;  %v939_v60 = vmul.f32 %v1476_v57, %v920_v51  ;;  %v922_v61 = vpop.xlane.xlu2 %921  ;;  %vm944_vm1 = vweird.f32 %v1476_v57 }
 0x343   : > { %v936_v62 = vsel %vm933_vm0, %v935_v58, %v931_v59  ;;  %1477 = vrcp.f32 %v922_v61  ;;  %vm945_vm3 = vmor %vm943_vm2, %vm944_vm1  ;;  %v964_v13 = vand.u32 2147483648, %v922_v61  ;;  %v962_v10 = vand.u32 2147483647, %v922_v61 }
 0x344   : > { %v937_v63 = vmul.f32 %v1468_v41, %v936_v62  ;;  %v940_v0 = vsub.f32 1.0, %v939_v60  ;;  %vm958_vm6 = vweird.f32 %v922_v61 }
 0x345   : > { %v965_v16 = vor.u32 1.1754944e-38, %v964_v13  ;;  %vm963_vm8 = vcmp.eq.f32.partialorder %v962_v10, 8.507059e+37 }
 0x346   : > { %968 = vst [vmem:[%s1924_s18] sm:$0xff] %v937_v63  ;;  %v941_v2 = vmul.f32 %v1476_v57, %v940_v0 }
 0x348   : > { %v942_v4 = vadd.f32 %v1476_v57, %v941_v2 }
 0x349   : > { %v1478_v5 = vpop.eup %1477 }
 0x34a   : > { %v946_v7 = vsel %vm945_vm3, %v1476_v57, %v942_v4  ;;  %v954_v8 = vmul.f32 %v1478_v5, %v922_v61  ;;  %vm959_vm5 = vweird.f32 %v1478_v5 }
 0x34b   : > { %v951_v9 = vsel %vm948_vm4, %v950_v6, %v946_v7  ;;  %vm960_vm7 = vmor %vm958_vm6, %vm959_vm5 }
 0x34c   : > { %v952_v11 = vmul.f32 %v1470_v45, %v951_v9  ;;  %v955_v12 = vsub.f32 1.0, %v954_v8 }
 0x34e   : > { %971 = vst [vmem:[%s1924_s18 + $0x18] sm:$0xff] %v952_v11  ;;  %v956_v14 = vmul.f32 %v1478_v5, %v955_v12 }
 0x350   : > { %v957_v15 = vadd.f32 %v1478_v5, %v956_v14 }
 0x352   : > { %v961_v17 = vsel %vm960_vm7, %v1478_v5, %v957_v15 }
 0x353   : > { %v966_v18 = vsel %vm963_vm8, %v965_v16, %v961_v17 }
 0x354   : > { %v967_v19 = vmul.f32 %v1472_v47, %v966_v18 }
 0x356   : > { %974 = vst [vmem:[%s1924_s18 + $0x30] sm:$0xff] %v967_v19 }
 0x357   : > { %1656 = shalt.err (!%p1653_p10)
}
 0x358   : > { %s1713_s3 = smov 384   ;;  %s1714_s16 = smov 24  }
 0x359   : > { %1365 = dma.vmem_to_hbm [thread:$0]  (%p1844_p3), %s992_s13, 1152, %s994_s28, %s978_s15, %s1713_s3, %s1713_s3, %s1714_s16  }
 0x35a PF: > { %p1398_p11 = scmp.ge.s32.totalorder %s1703_s27, 2  ;;  %s1008_s17 = sand.u32 1, %s1691_s24  }
 0x35b   : > { %s1009_s18 = scalar_lea.sflag [#allocation4], %s1008_s17 }
 0x35c   : > { %p1385_p12 = pnand %p1398_p11, %p1790_p6 }
 0x35e   : > { %p1386_p13 = pneg %p1385_p12 }
 0x360   : > { %1686 = dma.done.wait (%p1386_p13), %s1009_s18, 1152  }
 0x361   : > { %1688 = vsyncadd (%p1386_p13), %s1009_s18, 4294966144  ;;  %p22_p0 = scmp.ge.s32.totalorder %s1831_s23, 5   ;;  %s1995_s24 = smov %s1695_s25 }
 0x362   : > { %s1996_s25 = smov %s1699_s26  ;;  %s1997_s26 = smov %s1840_s19 }
 0x363   : > { %s1998_s27 = smov %s1831_s23  ;;  %24 = sbr.rel (!%p22_p0) target bundleno = 11 (0xb), region = 109 }
 0x368   :  { %1015 = vsyncpa [#allocation3], 1 }
 0x369   :  { %1017 = vsyncpa [#allocation3 + $0x1], 1 }
 0x36a   :  { %1018 = vsyncpa [#allocation6], 1 }
 0x36b   :  { %1019 = vsyncpa [#allocation9], 1 }
 0x36c   :  { %1020 = vsyncpa [#allocation4], 1 }
 0x36d   :  { %1022 = vsyncpa [#allocation4 + $0x1], 1 }

// kernel: tpu_custom_call.1
= control target key start
LH: loop header
LB: loop body
LE: loop exit
PB: predicated region body
PF: predicated region fallthrough
CT: control target
= control target key end

     0   :  { %s1971_s0 = inlined_call_operand.hbm [shape: bf16[72,256], index: 0, kind: input, shape index: {}]   ;;  %s1972_s1 = inlined_call_operand.hbm [shape: bf16[256,128], index: 1, kind: input, shape index: {}]   ;;  %s1973_s2 = inlined_call_operand.vmem [shape: f32[1,128], index: 2, kind: input, shape index: {}]   ;;  %s1974_s3 = inlined_call_operand.hbm [shape: bf16[128,128], index: 3, kind: input, shape index: {}]   ;;  %s1975_s4 = inlined_call_operand.hbm [shape: f32[1,128], index: 4, kind: input, shape index: {}]   ;;  %s1976_s5 = inlined_call_operand.hbm [shape: bf16[128,256], index: 5, kind: input, shape index: {}]   ;;  %s1977_s6 = inlined_call_operand.vmem [shape: f32[1,256], index: 6, kind: input, shape index: {}]   ;;  %s1978_s7 = inlined_call_operand.hbm [shape: f32[72,384], index: 7, kind: output, shape index: {}]  }
   0x1   :  { %1981 = sst [smem:[#allocation16_spill]] %s1972_s1 }
   0x2   :  { %1982 = sst [smem:[#allocation17_spill]] %s1974_s3 }
   0x3   :  { %1983 = sst [smem:[#allocation18_spill]] %s1975_s4 }
   0x4   :  { %12 = vsyncpa [#allocation3], 0 }
   0x5   :  { %14 = vsyncpa [#allocation3 + $0x1], 0 }
   0x6   :  { %15 = vsyncpa [#allocation6], 0 }
   0x7   :  { %16 = vsyncpa [#allocation9], 0 }
   0x8   :  { %17 = vsyncpa [#allocation4], 0 }
   0x9   :  { %19 = vsyncpa [#allocation4 + $0x1], 0  ;;  %s1755_s24 = smov 0   ;;  %s1757_s25 = smov 0  }
   0xa   :  { %s1759_s26 = smov 0   ;;  %s1761_s27 = smov 0  }
   0xb LB: > { %s1776_s28 = sadd.s32 4294967295, %s1703_s27   ;;  %s1105_s29 = sadd.s32 4294967294, %s1703_s27   ;;  %s1703_s27 = sphi %s1761_s27, %s1998_s27   ;;  %s1699_s26 = sphi %s1759_s26, %s1997_s26   ;;  %s1695_s25 = sphi %s1757_s25, %s1996_s25   ;;  %s1691_s24 = sphi %s1755_s24, %s1995_s24  }
   0xc   : > { %p45_p0 = scmp.ne.s32.totalorder %s1695_s25, %s1691_s24  ;;  %p46_p1 = scmp.eq.s32.totalorder %s1776_s28, 0 }
   0xd   : > { %p195_p2 = scmp.eq.s32.totalorder %s1776_s28, 2  ;;  %p201_p3 = scmp.eq.s32.totalorder %s1105_s29, 2 }
   0xe   : > { %p1785_p4 = por %p46_p1, %p45_p0  ;;  %p1106_p5 = scmp.ge.s32.totalorder %s1703_s27, 1 }
   0xf   : > { %p1790_p6 = por %p201_p3, %p45_p0  ;;  %p208_p7 = scmp.lt.s32.totalorder %s1703_s27, 4 }
  0x10   : > { %s1986_s1 = sld [smem:[#allocation16_spill]]  ;;  %s1705_s13 = smov [#allocation5]  }
  0x11   : > { %p1798_p8 = pnand %p1106_p5, %p208_p7  ;;  %s221_s14 = sshll.u32 %s1705_s13, 4  ;;  %s222_s14 = int_to_ptr.vmem [resolvable:$true] %s221_s14 }
  0x12   : > { %s1989_s4 = sld [smem:[#allocation18_spill]]  ;;  %s1706_s19 = smov 64  }
  0x13   : > { %p1367_p9 = pneg %p1798_p8  ;;  %s1707_s20 = smov 4  }
  0x14   : > { %s1708_s21 = smov [#allocation8]   ;;  %s1990_s3 = sld [smem:[#allocation17_spill]] }
  0x15   : > { %p1806_p10 = pnand %p1367_p9, %p46_p1  ;;  %s253_s22 = sshll.u32 %s1708_s21, 4  ;;  %s254_s22 = int_to_ptr.vmem [resolvable:$true] %s253_s22 }
  0x16   : > { %s219_s11 = sshll.u32 %s1986_s1, 4  ;;  %s262_s16 = sshll.u32 %s1976_s5, 4  ;;  %s220_s11 = int_to_ptr.hbm [resolvable:$true] %s219_s11  ;;  %s263_s16 = int_to_ptr.hbm [resolvable:$true] %s262_s16 }
  0x17   : > { %1370 = dma.hbm_to_vmem [thread:$0]  (!%p1806_p10), %s220_s11, 2048, %s222_s14, [#allocation6], %s1706_s19, %s1706_s19, %s1707_s20  }
  0x18   : > { %s251_s18 = sshll.u32 %s1989_s4, 4  ;;  %s1709_s11 = smov [#allocation7]   ;;  %s252_s18 = int_to_ptr.hbm [resolvable:$true] %s251_s18 }
  0x19   : > { %1376 = dma.hbm_to_vmem [thread:$0]  (!%p1806_p10), %s252_s18, 16, %s254_s22, [#allocation9]  }
  0x1a   : > { %s236_s9 = sshll.u32 %s1990_s3, 4  ;;  %s238_s14 = sshll.u32 %s1709_s11, 4  ;;  %s237_s9 = int_to_ptr.hbm [resolvable:$true] %s236_s9  ;;  %s239_s14 = int_to_ptr.vmem [resolvable:$true] %s238_s14 }
  0x1b   : > { %1373 = dma.hbm_to_vmem [thread:$0]  (!%p1806_p10), %s237_s9, 1024, %s239_s14, [#allocation6], %s1706_s19, %s1706_s19, %s1707_s20  }
  0x1c   : > { %s1710_s17 = smov [#allocation10]   ;;  %s1979_s21 = smov 128  }
  0x1d   : > { %s264_s18 = sshll.u32 %s1710_s17, 4  ;;  %s1980_s22 = smov 8   ;;  %s265_s18 = int_to_ptr.vmem [resolvable:$true] %s264_s18 }
  0x1e   : > { %1379 = dma.hbm_to_vmem [thread:$0]  (!%p1806_p10), %s263_s16, 2048, %s265_s18, [#allocation9], %s1979_s21, %s1979_s21, %s1980_s22  }
  0x1f   : > { %s1831_s23 = sadd.s32 1, %s1703_s27   ;;  %s32_s10 = sadd.s32 1, %s1699_s26 }
  0x20   : > { %s29_s29 = ssub.s32 %s1703_s27, %s1831_s23  ;;  %p39_p12 = scmp.ne.s32.totalorder %s1699_s26, %s1695_s25 }
  0x21   : > { %p30_p11 = scmp.eq.s32.totalorder %s29_s29, 0  ;;  %p40_p13 = scmp.eq.s32.totalorder %s1703_s27, 0 }
  0x22   : > { %p1844_p3 = por %p195_p2, %p39_p12  ;;  %p1392_p5 = scmp.lt.s32.totalorder %s1703_s27, 3 }
  0x23   : > { %s1840_s19 = scalar_select %p30_p11, %s1699_s26, %s32_s10  }
  0x24   : > { %p41_p0 = por %p40_p13, %p39_p12  ;;  %s281_s15 = sand.u32 1, %s1699_s26  }
  0x25   : > { %s1343_s9 = smul.u32 24, %s281_s15  ;;  %s282_s21 = scalar_lea.sflag [#allocation3], %s281_s15 }
  0x26   : > { %s1334_s13 = smul.u32 24, %s1703_s27  ;;  %p1851_p7 = pnand %p1392_p5, %p41_p0 }
  0x27   : > { %s285_s18 = scalar_lea.vmem [#allocation2], %s1343_s9  ;;  %s1606_s11 = scalar_lea.hbm %s1971_s0, 72 }
  0x28   : > { %s291_s17 = scalar_lea.hbm %s1971_s0, %s1334_s13  ;;  %s294_s29 = sshll.u32 %s285_s18, 4  ;;  %s295_s29 = int_to_ptr.vmem [resolvable:$true] %s294_s29 }
  0x29   : > { %s292_s10 = sshll.u32 %s291_s17, 4  ;;  %p1603_p9 = pneg %p1851_p7  ;;  %s293_s10 = int_to_ptr.hbm [resolvable:$true] %s292_s10 }
  0x2a   : > { %s1599_s22 = sshra.s32 %s293_s10, 4  ;;  %s1600_s22 = int_to_ptr.hbm [resolvable:$true] %s1599_s22 }
  0x2b   : > { %s1601_s1 = scalar_lea.hbm %s1600_s22, 24  ;;  %p1607_p12 = scmp.lt.s32.totalorder %s1600_s22, %s1971_s0 }
  0x2c   : > { %p1602_p2 = scmp.ne.s32.totalorder %s1600_s22, %s1601_s1  ;;  %p1608_p13 = scmp.lt.s32.totalorder %s1606_s11, %s1601_s1 }
  0x2e   : > { %p1604_p10 = pnand %p1603_p9, %p1602_p2  ;;  %p1609_p0 = por %p1608_p13, %p1607_p12 }
  0x30   : > { %p1605_p11 = pneg %p1604_p10 }
  0x32   : > { %p1610_p5 = pnand %p1609_p0, %p1605_p11 }
  0x34   : > { %1613 = shalt.err (!%p1610_p5)
}
  0x35   : > { %s1993_s15 = smov 8   ;;  %s1994_s9 = smov 128  }
  0x36   : > { %1383 = dma.hbm_to_vmem [thread:$0]  (!%p1851_p7), %s293_s10, 384, %s295_s29, %s282_s21, %s1994_s9, %s1994_s9, %s1993_s15  }
  0x37   : > { %306 = sbr.rel (%p1798_p8) target bundleno = 858 (0x35a), region = 48  ;;  %s1874_s3 = sand.u32 (!%p1798_p8), 1, %s1695_s25  }
  0x38   : > { %s1344_s4 = smul.u32 (!%p1798_p8), 24, %s1874_s3  ;;  %s309_s1 = scalar_lea.sflag (!%p1798_p8), [#allocation3], %s1874_s3 }
  0x3a   : > { %s1878_s22 = scalar_lea.vmem (!%p1798_p8), [#allocation2], %s1344_s4 }
  0x3c   : > { %1674 = dma.done.wait (%p1785_p4), %s309_s1, 384  }
  0x3d   : > { %1676 = vsyncadd (%p1785_p4), %s309_s1, 4294966912 }
  0x3e   : > { %1678 = dma.done.wait (%p46_p1), [#allocation6], 3072  }
  0x3f   : > { %1680 = vsyncadd (%p46_p1), [#allocation6], 4294964224 }
  0x40   : > { %1682 = dma.done.wait (%p46_p1), [#allocation9], 2064  }
  0x41   : > { %1684 = vsyncadd (%p46_p1), [#allocation9], 4294965232  ;;  %v1301_v0 = vld [vmem:[#allocation5 + $0x38] sm:$0xff]  ;;  %v1300_v2 = vld [vmem:[#allocation5 + $0x30] sm:$0xff]  ;;  %s1345_s17 = smul.u32 72, %s1874_s3  ;;  %s978_s15 = scalar_lea.sflag [#allocation4], %s1874_s3 }
  0x42   : > { %v1309_v1 = vld [vmem:[#allocation5 + $0x78] sm:$0xff]  ;;  %518 = vmatpush.bf16.msra.mxu0 %v1301_v0  ;;  %v1308_v3 = vld [vmem:[#allocation5 + $0x70] sm:$0xff]  ;;  %v1299_v4 = vld [vmem:[#allocation5 + $0x28] sm:$0xff]  ;;  %s1397_s29 = smul.u32 72, %s1776_s28  ;;  %s1649_s30 = scalar_lea.hbm %s1978_s7, 216 }
  0x43   : > { %536 = vmatpush.bf16.msra.mxu1 %v1309_v1  ;;  %v1307_v5 = vld [vmem:[#allocation5 + $0x68] sm:$0xff]  ;;  %v1298_v6 = vld [vmem:[#allocation5 + $0x20] sm:$0xff]  ;;  %v1297_v8 = vld [vmem:[#allocation5 + $0x18] sm:$0xff]  ;;  %s1924_s18 = scalar_lea.vmem [#allocation11], %s1345_s17 }
  0x44   : > { %v1306_v7 = vld [vmem:[#allocation5 + $0x60] sm:$0xff]  ;;  %v1305_v9 = vld [vmem:[#allocation5 + $0x58] sm:$0xff]  ;;  %v1296_v10 = vld [vmem:[#allocation5 + $0x10] sm:$0xff]  ;;  %s990_s14 = scalar_lea.hbm %s1978_s7, %s1397_s29  ;;  %s991_s13 = sshll.u32 %s1924_s18, 4  ;;  %s992_s13 = int_to_ptr.vmem [resolvable:$true] %s991_s13 }
  0x45   : > { %v1304_v11 = vld [vmem:[#allocation5 + $0x50] sm:$0xff]  ;;  %v1295_v12 = vld [vmem:[#allocation5 + $0x8] sm:$0xff]  ;;  %v1294_v14 = vld [vmem:[#allocation5] sm:$0xff]  ;;  %s993_s28 = sshll.u32 %s990_s14, 4  ;;  %s994_s28 = int_to_ptr.hbm [resolvable:$true] %s993_s28 }
  0x46   : > { %519 = vmatpush.bf16.msra.mxu0 %v1300_v2  ;;  %v1303_v13 = vld [vmem:[#allocation5 + $0x48] sm:$0xff]  ;;  %v1302_v15 = vld [vmem:[#allocation5 + $0x40] sm:$0xff]  ;;  %v1293_v17 = vld [vmem:[%s1878_s22 + $0x4] sm:$0xf0]  ;;  %s1643_s9 = sshra.s32 %s994_s28, 4  ;;  %s1644_s9 = int_to_ptr.hbm [resolvable:$true] %s1643_s9 }
  0x47   : > { %537 = vmatpush.bf16.msra.mxu1 %v1308_v3  ;;  %v1121_v16 = vld [vmem:[%s1878_s22] sm:$0xf]  ;;  %v1292_v18 = vld [vmem:[%s1878_s22 + $0x4] sm:$0xf]  ;;  %v1123_v19 = vld [vmem:[%s1878_s22 + $0x8] sm:$0xf0]  ;;  %p1650_p7 = scmp.lt.s32.totalorder %s1644_s9, %s1978_s7 }
  0x48   : > { %v1122_v20 = vor.u32 %v1293_v17, %v1121_v16  ;;  %v1126_v21 = vor.u32 %v1292_v18, %v1123_v19  ;;  %v368_v22 = vld [vmem:[%s1878_s22 + $0x10] sm:$0xff]  ;;  %v1316_v28 = vld [vmem:[#allocation7 + $0x30] sm:$0xff]  ;;  %v1315_v29 = vld [vmem:[#allocation7 + $0x28] sm:$0xff]  ;;  %s1645_s4 = scalar_lea.hbm %s1644_s9, 72 }
  0x49   : > { %v412_v23 = vunpack.c.l.b16 %v368_v22  ;;  %v413_v24 = vunpack.c.h.b16 %v368_v22  ;;  %v1317_v27 = vld [vmem:[#allocation7 + $0x38] sm:$0xff]  ;;  %v1314_v30 = vld [vmem:[#allocation7 + $0x20] sm:$0xff]  ;;  %v1441_v32 = vld [vmem:[%s1973_s2] ss:$0 sm:$0xff]  ;;  %p1646_p1 = scmp.ne.s32.totalorder %s1644_s9, %s1645_s4  ;;  %p1651_p2 = scmp.lt.s32.totalorder %s1649_s30, %s1645_s4 }
  0x4a   : > { %520 = vmatpush.bf16.msra.mxu0 %v1299_v4  ;;  %681 = vmatpush.bf16.msra.mxu2 %v1317_v27  ;;  %v1313_v31 = vld [vmem:[#allocation7 + $0x18] sm:$0xff]  ;;  %v1312_v33 = vld [vmem:[#allocation7 + $0x10] sm:$0xff]  ;;  %v1311_v37 = vld [vmem:[#allocation7 + $0x8] sm:$0xff] }
  0x4b   : > { %538 = vmatpush.bf16.msra.mxu1 %v1307_v5  ;;  %v416_v25 = vpack.c.b16 %v412_v23, %v412_v23  ;;  %v417_v26 = vpack.c.b16 %v413_v24, %v413_v24  ;;  %v1310_v40 = vld [vmem:[#allocation7] sm:$0xff]  ;;  %p1647_p4 = pnand %p1646_p1, %p1844_p3  ;;  %p1652_p9 = por %p1651_p2, %p1650_p7 }
  0x4d   : > { %p1648_p8 = pneg %p1647_p4 }
  0x4e   : > { %521 = vmatpush.bf16.msra.mxu0 %v1298_v6  ;;  %682 = vmatpush.bf16.msra.mxu2 %v1316_v28 }
  0x4f   : > { %539 = vmatpush.bf16.msra.mxu1 %v1306_v7  ;;  %p1653_p10 = pnand %p1652_p9, %p1648_p8 }
  0x52   : > { %522 = vmatpush.bf16.msra.mxu0 %v1297_v8  ;;  %683 = vmatpush.bf16.msra.mxu2 %v1315_v29 }
  0x53   : > { %540 = vmatpush.bf16.msra.mxu1 %v1305_v9 }
  0x56   : > { %523 = vmatpush.bf16.msra.mxu0 %v1296_v10  ;;  %684 = vmatpush.bf16.msra.mxu2 %v1314_v30 }
  0x57   : > { %541 = vmatpush.bf16.msra.mxu1 %v1304_v11 }
  0x5a   : > { %524 = vmatpush.bf16.msra.mxu0 %v1295_v12  ;;  %685 = vmatpush.bf16.msra.mxu2 %v1313_v31 }
  0x5b   : > { %542 = vmatpush.bf16.msra.mxu1 %v1303_v13 }
  0x5e   : > { %525 = vmatpush.bf16.msra.mxu0 %v1294_v14  ;;  %686 = vmatpush.bf16.msra.mxu2 %v1312_v33 }
  0x5f   : > { %543 = vmatpush.bf16.msra.mxu1 %v1302_v15 }
  0x61   : > { %526 = vmatmul.bf16.vlgmr.msra.gmra.mxu0 %v1122_v20 }
  0x62   : > { %544 = vmatmul.bf16.vlgmr.msra.gmra.mxu1 %v1126_v21  ;;  %687 = vmatpush.bf16.msra.mxu2 %v1311_v37  ;;  %v1333_v37 = vld [vmem:[#allocation10 + $0x74] sm:$0xf0] }
  0x66   : > { %688 = vmatpush.bf16.msra.mxu2 %v1310_v40 }
  0x71   : > { %531 = vmatmul.bf16.gmra.mxu0 %v416_v25 }
  0x72   : > { %549 = vmatmul.bf16.gmra.mxu1 %v417_v26 }
  0xde   : > { %v527_v34 = vpop.f32.mrf.mxu0 }
  0xdf   : > { %v545_v35 = vpop.f32.mrf.mxu1  ;;  %v528_v36 = vadd.f32 %v1441_v32, %v527_v34 }
  0xe1   : > { %v1900_v38 = vadd.f32 %v545_v35, %v528_v36  ;;  %v1281_v36 = vld [vmem:[#allocation10 + $0x70] sm:$0xf] }
  0xe2   : > { %v1282_v40 = vor.u32 %v1333_v37, %v1281_v36 }
  0xe3   : > { %v1903_v39 = vsub.f32 0.0, %v1900_v38  ;;  %v554_v14 = vmax.f32 %v1900_v38, 0.0 }
  0xe4   : > { %860 = vmatpush.bf16.msra.mxu3 %v1282_v40 }
  0xe5   : > { %v566_v41 = vand.u32 2147483647, %v1903_v39  ;;  %vm560_vm2 = vcmp.ne.f32.partialorder %v1903_v39, %v1903_v39  ;;  %v1332_v39 = vld [vmem:[#allocation10 + $0x74] sm:$0xf] }
  0xe6   : > { %v529_v42 = vpop.f32.mrf.mxu0 }
  0xe7   : > { %v547_v43 = vpop.f32.mrf.mxu1  ;;  %v569_v44 = vsub.f32 0.0, %v566_v41  ;;  %v530_v45 = vadd.f32 %v1441_v32, %v529_v42  ;;  %v1273_v42 = vld [vmem:[#allocation10 + $0x60] sm:$0xf] }
  0xe9   : > { %v572_v46 = vmul.f32 1.442695, %v569_v44  ;;  %v548_v47 = vadd.f32 %v547_v43, %v530_v45  ;;  %v1331_v43 = vld [vmem:[#allocation10 + $0x64] sm:$0xf0]  ;;  %v1330_v44 = vld [vmem:[#allocation10 + $0x64] sm:$0xf] }
  0xea   : > { %v1274_v45 = vor.u32 %v1331_v43, %v1273_v42 }
  0xeb   : > { %1443 = vpow2.f32 %v572_v46  ;;  %v558_v48 = vsub.f32 0.0, %v548_v47  ;;  %v555_v19 = vmax.f32 %v548_v47, 0.0  ;;  %v1275_v46 = vld [vmem:[#allocation10 + $0x68] sm:$0xf0] }
  0xec   : > { %861 = vmatpush.bf16.msra.mxu3 %v1274_v45 }
  0xed   : > { %v567_v49 = vand.u32 2147483647, %v558_v48  ;;  %vm561_vm3 = vcmp.ne.f32.partialorder %v558_v48, %v558_v48  ;;  %v1265_v48 = vld [vmem:[#allocation10 + $0x50] sm:$0xf] }
  0xee   : > { %v532_v50 = vpop.f32.mrf.mxu0 }
  0xef   : > { %v550_v51 = vpop.f32.mrf.mxu1  ;;  %v570_v52 = vsub.f32 0.0, %v567_v49  ;;  %v533_v53 = vadd.f32 %v1441_v32, %v532_v50  ;;  %v1329_v49 = vld [vmem:[#allocation10 + $0x54] sm:$0xf0]  ;;  %v1328_v50 = vld [vmem:[#allocation10 + $0x54] sm:$0xf] }
  0xf1   : > { %v1444_v54 = vpop.eup %1443  ;;  %v574_v55 = vmul.f32 1.442695, %v570_v52  ;;  %v551_v56 = vadd.f32 %v550_v51, %v533_v53  ;;  %v1266_v51 = vor.u32 %v1329_v49, %v1265_v48  ;;  %v1267_v52 = vld [vmem:[#allocation10 + $0x58] sm:$0xf0] }
  0xf2   : > { %v578_v57 = vadd.f32 1.0, %v1444_v54  ;;  %v581_v63 = vmul.f32 -0.5, %v1444_v54  ;;  %v584_v6 = vand.u32 2147483647, %v1444_v54  ;;  %v1270_v53 = vor.u32 %v1328_v50, %v1267_v52 }
  0xf3   : > { %1445 = vpow2.f32 %v574_v55  ;;  %v559_v58 = vsub.f32 0.0, %v551_v56  ;;  %v556_v32 = vmax.f32 %v551_v56, 0.0  ;;  %862 = vmatpush.bf16.msra.mxu3 %v1266_v51  ;;  %v1327_v55 = vld [vmem:[#allocation10 + $0x44] sm:$0xf0] }
  0xf4   : > { %1447 = vlog2.f32 %v578_v57  ;;  %v582_v4 = vadd.f32 1.0, %v581_v63  ;;  %vm585_vm0 = vcmp.lt.f32.partialorder %v584_v6, 0.0004427343 }
  0xf5   : > { %v568_v59 = vand.u32 2147483647, %v559_v58  ;;  %vm562_vm5 = vcmp.ne.f32.partialorder %v559_v58, %v559_v58  ;;  %v1259_v58 = vld [vmem:[#allocation10 + $0x48] sm:$0xf0] }
  0xf6   : > { %v534_v60 = vpop.f32.mrf.mxu0  ;;  %v583_v8 = vmul.f32 %v1444_v54, %v582_v4  ;;  %v1257_v54 = vld [vmem:[#allocation10 + $0x40] sm:$0xf]  ;;  %v1323_v4 = vld [vmem:[#allocation10 + $0x24] sm:$0xf0] }
  0xf7   : > { %v552_v61 = vpop.f32.mrf.mxu1  ;;  %v571_v62 = vsub.f32 0.0, %v568_v59  ;;  %v1258_v57 = vor.u32 %v1327_v55, %v1257_v54  ;;  %v1249_v60 = vld [vmem:[#allocation10 + $0x30] sm:$0xf] }
  0xf8   : > { %v1325_v61 = vld [vmem:[#allocation10 + $0x34] sm:$0xf0] }
  0xf9   : > { %v1446_v0 = vpop.eup %1445  ;;  %v576_v1 = vmul.f32 1.442695, %v571_v62  ;;  %863 = vmatpush.bf16.msra.mxu3 %v1258_v57  ;;  %v1324_v62 = vld [vmem:[#allocation10 + $0x34] sm:$0xf]  ;;  %v1250_v63 = vor.u32 %v1325_v61, %v1249_v60 }
  0xfa   : > { %v1448_v2 = vpop.eup %1447  ;;  %v587_v3 = vadd.f32 1.0, %v1446_v0  ;;  %v590_v5 = vmul.f32 -0.5, %v1446_v0  ;;  %v593_v10 = vand.u32 2147483647, %v1446_v0 }
  0xfb   : > { %1449 = vpow2.f32 %v576_v1  ;;  %v580_v7 = vmul.f32 0.6931472, %v1448_v2  ;;  %v1442_v2 = vld [vmem:[#allocation8] ss:$0 sm:$0xff] }
  0xfc   : > { %1451 = vlog2.f32 %v587_v3  ;;  %v591_v9 = vadd.f32 1.0, %v590_v5  ;;  %vm594_vm1 = vcmp.lt.f32.partialorder %v593_v10, 0.0004427343  ;;  %v1241_v3 = vld [vmem:[#allocation10 + $0x20] sm:$0xf] }
  0xfd   : > { %v586_v12 = vsel %vm585_vm0, %v583_v8, %v580_v7  ;;  %864 = vmatpush.bf16.msra.mxu3 %v1250_v63  ;;  %v1322_v5 = vld [vmem:[#allocation10 + $0x24] sm:$0xf]  ;;  %v1242_v6 = vor.u32 %v1323_v4, %v1241_v3  ;;  %v1243_v7 = vld [vmem:[#allocation10 + $0x28] sm:$0xf0] }
  0xfe   : > { %v592_v17 = vmul.f32 %v1446_v0, %v591_v9  ;;  %v605_v20 = vadd.f32 %v586_v12, %v554_v14  ;;  %v1251_v0 = vld [vmem:[#allocation10 + $0x38] sm:$0xf0]  ;;  %v1246_v8 = vor.u32 %v1322_v5, %v1243_v7  ;;  %v1321_v12 = vld [vmem:[#allocation10 + $0x14] sm:$0xf0] }
  0xff   : > { %v1254_v1 = vor.u32 %v1324_v62, %v1251_v0 }
 0x100   : > { %v608_v24 = vsel %vm560_vm2, %v1900_v38, %v605_v20  ;;  %v1283_v38 = vld [vmem:[#allocation10 + $0x78] sm:$0xf0]  ;;  %v1319_v20 = vld [vmem:[#allocation10 + $0x4] sm:$0xf0] }
 0x101   : > { %v1450_v11 = vpop.eup %1449  ;;  %v1286_v41 = vor.u32 %v1332_v39, %v1283_v38  ;;  %865 = vmatpush.bf16.msra.mxu3 %v1242_v6 }
 0x102   : > { %v1452_v13 = vpop.eup %1451  ;;  %v596_v15 = vadd.f32 1.0, %v1450_v11  ;;  %v599_v18 = vmul.f32 -0.5, %v1450_v11  ;;  %v602_v26 = vand.u32 2147483647, %v1450_v11 }
 0x103   : > { %v589_v16 = vmul.f32 0.6931472, %v1452_v13  ;;  %878 = vmatpush.bf16.msrb.mxu0 %v1286_v41  ;;  %1335 = vmatpush.bf16.msrb.mxu1 %v1286_v41  ;;  %v1320_v13 = vld [vmem:[#allocation10 + $0x14] sm:$0xf] }
 0x104   : > { %1453 = vlog2.f32 %v596_v15  ;;  %v600_v23 = vadd.f32 1.0, %v599_v18  ;;  %vm603_vm4 = vcmp.lt.f32.partialorder %v602_v26, 0.0004427343  ;;  %v1235_v15 = vld [vmem:[#allocation10 + $0x18] sm:$0xf0] }
 0x105   : > { %v595_v21 = vsel %vm594_vm1, %v592_v17, %v589_v16  ;;  %v1238_v17 = vor.u32 %v1320_v13, %v1235_v15 }
 0x106   : > { %v606_v22 = vadd.f32 %v595_v21, %v555_v19  ;;  %v601_v30 = vmul.f32 %v1450_v11, %v600_v23  ;;  %v1233_v11 = vld [vmem:[#allocation10 + $0x10] sm:$0xf]  ;;  %v1225_v19 = vld [vmem:[#allocation10] sm:$0xf]  ;;  %v1227_v23 = vld [vmem:[#allocation10 + $0x8] sm:$0xf0] }
 0x107   : > { %v1234_v14 = vor.u32 %v1321_v12, %v1233_v11  ;;  %v1226_v21 = vor.u32 %v1319_v20, %v1225_v19 }
 0x108   : > { %v609_v25 = vsel %vm561_vm3, %v548_v47, %v606_v22  ;;  %v1278_v47 = vor.u32 %v1330_v44, %v1275_v46  ;;  %v1318_v22 = vld [vmem:[#allocation10 + $0x4] sm:$0xf] }
 0x109   : > { %v611_v27 = vpack.c.bf16 %v609_v25, %v608_v24  ;;  %866 = vmatpush.bf16.msra.mxu3 %v1234_v14  ;;  %v1230_v25 = vor.u32 %v1318_v22, %v1227_v23 }
 0x10a   : > { %v1454_v28 = vpop.eup %1453  ;;  %879 = vmatpush.bf16.msrb.mxu0 %v1278_v47  ;;  %1336 = vmatpush.bf16.msrb.mxu1 %v1278_v47 }
 0x10b   : > { %689 = vmatmul.bf16.vlgmr.msra.gmra.mxu2 %v611_v27  ;;  %v598_v29 = vmul.f32 0.6931472, %v1454_v28 }
 0x10d   : > { %v604_v31 = vsel %vm603_vm4, %v601_v30, %v598_v29  ;;  %867 = vmatpush.bf16.msra.mxu3 %v1226_v21 }
 0x10e   : > { %v607_v33 = vadd.f32 %v604_v31, %v556_v32  ;;  %880 = vmatpush.bf16.msrb.mxu0 %v1270_v53  ;;  %1337 = vmatpush.bf16.msrb.mxu1 %v1270_v53 }
 0x110   : > { %v610_v34 = vsel %vm562_vm5, %v551_v56, %v607_v33  ;;  %v1326_v56 = vld [vmem:[#allocation10 + $0x44] sm:$0xf] }
 0x111   : > { %v612_v35 = vpack.c.bf16 %v610_v34, %v610_v34  ;;  %v1262_v59 = vor.u32 %v1326_v56, %v1259_v58 }
 0x113   : > { %881 = vmatpush.bf16.msrb.mxu0 %v1262_v59  ;;  %1338 = vmatpush.bf16.msrb.mxu1 %v1262_v59 }
 0x117   : > { %882 = vmatpush.bf16.msrb.mxu0 %v1254_v1  ;;  %1339 = vmatpush.bf16.msrb.mxu1 %v1254_v1 }
 0x11b   : > { %694 = vmatmul.bf16.gmra.mxu2 %v612_v35  ;;  %883 = vmatpush.bf16.msrb.mxu0 %v1246_v8 }
 0x11c   : > { %1340 = vmatpush.bf16.msrb.mxu1 %v1246_v8 }
 0x11f   : > { %884 = vmatpush.bf16.msrb.mxu0 %v1238_v17 }
 0x120   : > { %1341 = vmatpush.bf16.msrb.mxu1 %v1238_v17 }
 0x123   : > { %885 = vmatpush.bf16.msrb.mxu0 %v1230_v25 }
 0x124   : > { %1342 = vmatpush.bf16.msrb.mxu1 %v1230_v25 }
 0x18e   : > { %v690_v9 = vpop.f32.mrf.mxu2 }
 0x18f   : > { %v1910_v10 = vadd.f32 %v1442_v2, %v690_v9 }
 0x191   : > { %v1913_v16 = vsub.f32 0.0, %v1910_v10  ;;  %v699_v56 = vmax.f32 %v1910_v10, 0.0 }
 0x193   : > { %v711_v18 = vand.u32 2147483647, %v1913_v16  ;;  %vm705_vm8 = vcmp.ne.f32.partialorder %v1913_v16, %v1913_v16  ;;  %v896_v16 = vlaneseq }
 0x195   : > { %v714_v24 = vsub.f32 0.0, %v711_v18  ;;  %v897_v19 = vand.u32 127, %v896_v16 }
 0x196   : > { %v692_v26 = vpop.f32.mrf.mxu2 }
 0x197   : > { %v717_v27 = vmul.f32 1.442695, %v714_v24  ;;  %v693_v28 = vadd.f32 %v1442_v2, %v692_v26  ;;  %vm898_vm12 = vcmp.lt.s32.totalorder %v897_v19, 32 }
 0x199   : > { %1455 = vpow2.f32 %v717_v27  ;;  %v703_v29 = vsub.f32 0.0, %v693_v28  ;;  %v700_v61 = vmax.f32 %v693_v28, 0.0 }
 0x19b   : > { %v712_v30 = vand.u32 2147483647, %v703_v29  ;;  %vm706_vm9 = vcmp.ne.f32.partialorder %v703_v29, %v703_v29 }
 0x19d   : > { %v715_v31 = vsub.f32 0.0, %v712_v30 }
 0x19e   : > { %v695_v32 = vpop.f32.mrf.mxu2 }
 0x19f   : > { %v1456_v33 = vpop.eup %1455  ;;  %v719_v34 = vmul.f32 1.442695, %v715_v31  ;;  %v696_v35 = vadd.f32 %v1442_v2, %v695_v32 }
 0x1a0   : > { %v723_v36 = vadd.f32 1.0, %v1456_v33  ;;  %v726_v38 = vmul.f32 -0.5, %v1456_v33  ;;  %v729_v48 = vand.u32 2147483647, %v1456_v33 }
 0x1a1   : > { %1457 = vpow2.f32 %v719_v34  ;;  %v704_v37 = vsub.f32 0.0, %v696_v35  ;;  %v701_v9 = vmax.f32 %v696_v35, 0.0 }
 0x1a2   : > { %1459 = vlog2.f32 %v723_v36  ;;  %v727_v46 = vadd.f32 1.0, %v726_v38  ;;  %vm730_vm6 = vcmp.lt.f32.partialorder %v729_v48, 0.0004427343 }
 0x1a3   : > { %v713_v39 = vand.u32 2147483647, %v704_v37  ;;  %vm707_vm11 = vcmp.ne.f32.partialorder %v704_v37, %v704_v37 }
 0x1a4   : > { %v728_v50 = vmul.f32 %v1456_v33, %v727_v46 }
 0x1a5   : > { %v716_v40 = vsub.f32 0.0, %v713_v39 }
 0x1a6   : > { %v697_v41 = vpop.f32.mrf.mxu2 }
 0x1a7   : > { %v1458_v42 = vpop.eup %1457  ;;  %v721_v43 = vmul.f32 1.442695, %v716_v40 }
 0x1a8   : > { %v1460_v44 = vpop.eup %1459  ;;  %v732_v45 = vadd.f32 1.0, %v1458_v42  ;;  %v735_v47 = vmul.f32 -0.5, %v1458_v42  ;;  %v738_v52 = vand.u32 2147483647, %v1458_v42 }
 0x1a9   : > { %1461 = vpow2.f32 %v721_v43  ;;  %v725_v49 = vmul.f32 0.6931472, %v1460_v44 }
 0x1aa   : > { %1463 = vlog2.f32 %v732_v45  ;;  %v736_v51 = vadd.f32 1.0, %v735_v47  ;;  %vm739_vm7 = vcmp.lt.f32.partialorder %v738_v52, 0.0004427343 }
 0x1ab   : > { %v731_v54 = vsel %vm730_vm6, %v728_v50, %v725_v49 }
 0x1ac   : > { %v737_v60 = vmul.f32 %v1458_v42, %v736_v51  ;;  %v750_v62 = vadd.f32 %v731_v54, %v699_v56 }
 0x1ae   : > { %v753_v3 = vsel %vm705_vm8, %v1910_v10, %v750_v62  ;;  %v774_v10 = vld [vmem:[%s1977_s6] sm:$0x3] }
 0x1af   : > { %v1462_v53 = vpop.eup %1461  ;;  %v777_v15 = vperm.slane %v774_v10, 1  ;;  %v776_v20 = vperm.slane %v774_v10, 0 }
 0x1b0   : > { %v1464_v55 = vpop.eup %1463  ;;  %v741_v57 = vadd.f32 1.0, %v1462_v53  ;;  %v744_v58 = vmul.f32 -0.5, %v1462_v53  ;;  %v747_v2 = vand.u32 2147483647, %v1462_v53 }
 0x1b1   : > { %v734_v59 = vmul.f32 0.6931472, %v1464_v55 }
 0x1b2   : > { %1465 = vlog2.f32 %v741_v57  ;;  %v745_v1 = vadd.f32 1.0, %v744_v58  ;;  %vm748_vm10 = vcmp.lt.f32.partialorder %v747_v2, 0.0004427343 }
 0x1b3   : > { %v740_v63 = vsel %vm739_vm7, %v737_v60, %v734_v59 }
 0x1b4   : > { %v751_v0 = vadd.f32 %v740_v63, %v700_v61  ;;  %v746_v8 = vmul.f32 %v1462_v53, %v745_v1 }
 0x1b6   : > { %v754_v4 = vsel %vm706_vm9, %v693_v28, %v751_v0 }
 0x1b7   : > { %v756_v5 = vpack.c.bf16 %v754_v4, %v753_v3 }
 0x1b8   : > { %v1466_v6 = vpop.eup %1465 }
 0x1b9   : > { %v743_v7 = vmul.f32 0.6931472, %v1466_v6  ;;  %868 = vmatmul.bf16.vlgmr.msra.gmra.mxu3 %v756_v5  ;;  %886 = vmatmul.bf16.vlgmr.msrb.gmra.mxu0 %v756_v5 }
 0x1bb   : > { %v749_v11 = vsel %vm748_vm10, %v746_v8, %v743_v7 }
 0x1bc   : > { %v752_v12 = vadd.f32 %v749_v11, %v701_v9 }
 0x1be   : > { %v755_v13 = vsel %vm707_vm11, %v696_v35, %v752_v12 }
 0x1bf   : > { %v757_v14 = vpack.c.bf16 %v755_v13, %v755_v13 }
 0x1c1   : > { %891 = vmatmul.bf16.vlgmr.msrb.gmra.mxu1 %v757_v14 }
 0x1c9   : > { %873 = vmatmul.bf16.gmra.mxu3 %v757_v14 }
 0x236   : > { %v887_v17 = vpop.f32.mrf.mxu0 }
 0x237   : > { %v888_v18 = vadd.f32 %v887_v17, %v777_v15 }
 0x239   : > { %970 = vst [vmem:[%s1924_s18 + $0x10] sm:$0xff] %v888_v18 }
 0x23c   : > { %v869_v21 = vpop.f32.mrf.mxu3 }
 0x23d   : > { %v870_v22 = vadd.f32 %v869_v21, %v776_v20 }
 0x23e   : > { %v889_v23 = vpop.f32.mrf.mxu0  ;;  %v892_v24 = vpop.f32.mrf.mxu1 }
 0x23f   : > { %969 = vst [vmem:[%s1924_s18 + $0x8] sm:$0xff] %v870_v22  ;;  %v890_v25 = vadd.f32 %v889_v23, %v777_v15  ;;  %v893_v26 = vadd.f32 %v892_v24, %v777_v15  ;;  %v899_v27 = vsel %vm898_vm12, %v870_v22, -1e+30 }
 0x240   : > { %902 = vmax.xlane.f32.xlu0 %v899_v27 }
 0x241   : > { %973 = vst [vmem:[%s1924_s18 + $0x28] sm:$0xff] %v890_v25 }
 0x242   : > { %976 = vst [vmem:[%s1924_s18 + $0x40] sm:$0xff] %v893_v26 }
 0x244   : > { %v871_v28 = vpop.f32.mrf.mxu3 }
 0x245   : > { %v872_v29 = vadd.f32 %v871_v28, %v776_v20 }
 0x246   : > { %v894_v30 = vpop.f32.mrf.mxu1 }
 0x247   : > { %972 = vst [vmem:[%s1924_s18 + $0x20] sm:$0xff] %v872_v29  ;;  %v900_v31 = vsel %vm898_vm12, %v872_v29, -1e+30 }
 0x248   : > { %904 = vmax.xlane.f32.xlu0 %v900_v31 }
 0x24c   : > { %v874_v32 = vpop.f32.mrf.mxu3 }
 0x24d   : > { %v875_v33 = vadd.f32 %v874_v32, %v776_v20 }
 0x24f   : > { %975 = vst [vmem:[%s1924_s18 + $0x38] sm:$0xff] %v875_v33  ;;  %v901_v34 = vsel %vm898_vm12, %v875_v33, -1e+30 }
 0x250   : > { %906 = vmax.xlane.f32.xlu1 %v901_v34 }
 0x254   : > { %v876_v35 = vpop.f32.mrf.mxu3 }
 0x2b3   : > { %v903_v36 = vpop.xlane.xlu0 %902 }
 0x2b4   : > { %v908_v37 = vsub.f32 %v899_v27, %v903_v36 }
 0x2b6   : > { %v911_v39 = vmul.f32 1.442695, %v908_v37 }
 0x2b8   : > { %1467 = vpow2.f32 %v911_v39 }
 0x2bb   : > { %v905_v40 = vpop.xlane.xlu0 %904 }
 0x2bc   : > { %v909_v38 = vsub.f32 %v900_v31, %v905_v40 }
 0x2be   : > { %v1468_v41 = vpop.eup %1467  ;;  %v913_v42 = vmul.f32 1.442695, %v909_v38 }
 0x2bf   : > { %917 = vadd.xlane.f32.xlu1 %v1468_v41 }
 0x2c0   : > { %1469 = vpow2.f32 %v913_v42 }
 0x2c3   : > { %v907_v43 = vpop.xlane.xlu1 %906 }
 0x2c4   : > { %v910_v44 = vsub.f32 %v901_v34, %v907_v43 }
 0x2c6   : > { %v1470_v45 = vpop.eup %1469  ;;  %v915_v46 = vmul.f32 1.442695, %v910_v44 }
 0x2c7   : > { %919 = vadd.xlane.f32.xlu2 %v1470_v45 }
 0x2c8   : > { %1471 = vpow2.f32 %v915_v46 }
 0x2ce   : > { %v1472_v47 = vpop.eup %1471 }
 0x2cf   : > { %921 = vadd.xlane.f32.xlu2 %v1472_v47 }
 0x332   : > { %v918_v48 = vpop.xlane.xlu1 %917 }
 0x333   : > { %1473 = vrcp.f32 %v918_v48  ;;  %v934_v53 = vand.u32 2147483648, %v918_v48  ;;  %v932_v55 = vand.u32 2147483647, %v918_v48  ;;  %vm928_vm14 = vweird.f32 %v918_v48 }
 0x335   : > { %v935_v58 = vor.u32 1.1754944e-38, %v934_v53  ;;  %vm933_vm0 = vcmp.eq.f32.partialorder %v932_v55, 8.507059e+37 }
 0x339   : > { %v1474_v49 = vpop.eup %1473 }
 0x33a   : > { %v924_v50 = vmul.f32 %v1474_v49, %v918_v48  ;;  %v920_v51 = vpop.xlane.xlu2 %919  ;;  %vm929_vm13 = vweird.f32 %v1474_v49 }
 0x33b   : > { %1475 = vrcp.f32 %v920_v51  ;;  %vm930_vm15 = vmor %vm928_vm14, %vm929_vm13  ;;  %v949_v1 = vand.u32 2147483648, %v920_v51  ;;  %v947_v3 = vand.u32 2147483647, %v920_v51  ;;  %vm943_vm2 = vweird.f32 %v920_v51 }
 0x33c   : > { %v925_v52 = vsub.f32 1.0, %v924_v50 }
 0x33d   : > { %v950_v6 = vor.u32 1.1754944e-38, %v949_v1  ;;  %vm948_vm4 = vcmp.eq.f32.partialorder %v947_v3, 8.507059e+37 }
 0x33e   : > { %v926_v54 = vmul.f32 %v1474_v49, %v925_v52 }
 0x340   : > { %v927_v56 = vadd.f32 %v1474_v49, %v926_v54 }
 0x341   : > { %v1476_v57 = vpop.eup %1475 }
 0x342   : > { %v931_v59 = vsel %vm930_vm15, %v1474_v49, %v927_v56  ;;  %v939_v60 = vmul.f32 %v1476_v57, %v920_v51  ;;  %v922_v61 = vpop.xlane.xlu2 %921  ;;  %vm944_vm1 = vweird.f32 %v1476_v57 }
 0x343   : > { %v936_v62 = vsel %vm933_vm0, %v935_v58, %v931_v59  ;;  %1477 = vrcp.f32 %v922_v61  ;;  %vm945_vm3 = vmor %vm943_vm2, %vm944_vm1  ;;  %v964_v13 = vand.u32 2147483648, %v922_v61  ;;  %v962_v10 = vand.u32 2147483647, %v922_v61 }
 0x344   : > { %v937_v63 = vmul.f32 %v1468_v41, %v936_v62  ;;  %v940_v0 = vsub.f32 1.0, %v939_v60  ;;  %vm958_vm6 = vweird.f32 %v922_v61 }
 0x345   : > { %v965_v16 = vor.u32 1.1754944e-38, %v964_v13  ;;  %vm963_vm8 = vcmp.eq.f32.partialorder %v962_v10, 8.507059e+37 }
 0x346   : > { %968 = vst [vmem:[%s1924_s18] sm:$0xff] %v937_v63  ;;  %v941_v2 = vmul.f32 %v1476_v57, %v940_v0 }
 0x348   : > { %v942_v4 = vadd.f32 %v1476_v57, %v941_v2 }
 0x349   : > { %v1478_v5 = vpop.eup %1477 }
 0x34a   : > { %v946_v7 = vsel %vm945_vm3, %v1476_v57, %v942_v4  ;;  %v954_v8 = vmul.f32 %v1478_v5, %v922_v61  ;;  %vm959_vm5 = vweird.f32 %v1478_v5 }
 0x34b   : > { %v951_v9 = vsel %vm948_vm4, %v950_v6, %v946_v7  ;;  %vm960_vm7 = vmor %vm958_vm6, %vm959_vm5 }
 0x34c   : > { %v952_v11 = vmul.f32 %v1470_v45, %v951_v9  ;;  %v955_v12 = vsub.f32 1.0, %v954_v8 }
 0x34e   : > { %971 = vst [vmem:[%s1924_s18 + $0x18] sm:$0xff] %v952_v11  ;;  %v956_v14 = vmul.f32 %v1478_v5, %v955_v12 }
 0x350   : > { %v957_v15 = vadd.f32 %v1478_v5, %v956_v14 }
 0x352   : > { %v961_v17 = vsel %vm960_vm7, %v1478_v5, %v957_v15 }
 0x353   : > { %v966_v18 = vsel %vm963_vm8, %v965_v16, %v961_v17 }
 0x354   : > { %v967_v19 = vmul.f32 %v1472_v47, %v966_v18 }
 0x356   : > { %974 = vst [vmem:[%s1924_s18 + $0x30] sm:$0xff] %v967_v19 }
 0x357   : > { %1656 = shalt.err (!%p1653_p10)
}
 0x358   : > { %s1713_s3 = smov 384   ;;  %s1714_s16 = smov 24  }
 0x359   : > { %1365 = dma.vmem_to_hbm [thread:$0]  (%p1844_p3), %s992_s13, 1152, %s994_s28, %s978_s15, %s1713_s3, %s1713_s3, %s1714_s16  }
 0x35a PF: > { %p1398_p11 = scmp.ge.s32.totalorder %s1703_s27, 2  ;;  %s1008_s17 = sand.u32 1, %s1691_s24  }
 0x35b   : > { %s1009_s18 = scalar_lea.sflag [#allocation4], %s1008_s17 }
 0x35c   : > { %p1385_p12 = pnand %p1398_p11, %p1790_p6 }
 0x35e   : > { %p1386_p13 = pneg %p1385_p12 }
 0x360   : > { %1686 = dma.done.wait (%p1386_p13), %s1009_s18, 1152  }
 0x361   : > { %1688 = vsyncadd (%p1386_p13), %s1009_s18, 4294966144  ;;  %p22_p0 = scmp.ge.s32.totalorder %s1831_s23, 5   ;;  %s1995_s24 = smov %s1695_s25 }
 0x362   : > { %s1996_s25 = smov %s1699_s26  ;;  %s1997_s26 = smov %s1840_s19 }
 0x363   : > { %s1998_s27 = smov %s1831_s23  ;;  %24 = sbr.rel (!%p22_p0) target bundleno = 11 (0xb), region = 109 }
 0x368   :  { %1015 = vsyncpa [#allocation3], 1 }
 0x369   :  { %1017 = vsyncpa [#allocation3 + $0x1], 1 }
 0x36a   :  { %1018 = vsyncpa [#allocation6], 1 }
 0x36b   :  { %1019 = vsyncpa [#allocation9], 1 }
 0x36c   :  { %1020 = vsyncpa [#allocation4], 1 }
 0x36d   :  { %1022 = vsyncpa [#allocation4 + $0x1], 1 }

</bundles_post_ra>
